<compile_context>
chip_gen: v6e
topology: v6e:2x2x1
jax: 0.10.0
libtpu: 0.0.40
codegen_flags: <defaults>
</compile_context>

<pallas_src>
import functools
import math

import jax
import jax.numpy as jnp
from jax.experimental import pallas as pl
from jax.experimental.pallas import tpu as pltpu


def _fused_lstm_fc_kernel(*refs, T, B, H, num_layers):
    """Fused multi-layer LSTM + FC.  No grid; everything resident in VMEM.

    refs layout (all 2-D):
      refs[0]              : x_flat      (T*B, D)   time-major, batch padded to B
      refs[1 + 3*l + 0]    : W_ih_l^T    (D_l, 4H)
      refs[1 + 3*l + 1]    : W_hh_l^T    (H, 4H)
      refs[1 + 3*l + 2]    : bias_l      (1, 4H)    b_ih + b_hh
      refs[1 + 3*L + 0]    : W_fc^T      (H, C)
      refs[1 + 3*L + 1]    : b_fc        (1, C)
      refs[1 + 3*L + 2]    : out         (B, C)     (output ref)
      refs[1 + 3*L + 3]    : seq scratch (T*B, H)   inter-layer hidden sequence
    """
    x_ref = refs[0]
    fcw_ref = refs[1 + 3 * num_layers]
    fcb_ref = refs[2 + 3 * num_layers]
    out_ref = refs[3 + 3 * num_layers]
    seq_ref = refs[4 + 3 * num_layers]

    seq = x_ref[...]                                   # (T*B, D_in) layer-0 input
    h = None

    for l in range(num_layers):
        wih = refs[1 + 3 * l][...]                     # (D_l, 4H)
        whh = refs[2 + 3 * l][...]                     # (H, 4H)
        bias = refs[3 + 3 * l][...]                    # (1, 4H)

        # Batched input projection for all timesteps at once, bias folded in.
        pre = jnp.dot(seq, wih, preferred_element_type=jnp.float32) + bias   # (T*B, 4H)

        h = jnp.zeros((B, H), jnp.float32)
        c = jnp.zeros((B, H), jnp.float32)
        last_layer = l == num_layers - 1

        for t in range(T):                             # static unrolled time loop
            gates = pre[t * B:(t + 1) * B, :] + jnp.dot(
                h, whh, preferred_element_type=jnp.float32)                  # (B, 4H)
            # Full-width activations over the 128-lane gates vreg, then slice.
            sg = jax.nn.sigmoid(gates)
            tg = jnp.tanh(gates)
            i_g = sg[:, 0 * H:1 * H]
            f_g = sg[:, 1 * H:2 * H]
            g_g = tg[:, 2 * H:3 * H]
            o_g = sg[:, 3 * H:4 * H]
            c = f_g * c + i_g * g_g
            h = o_g * jnp.tanh(c)
            if not last_layer:
                seq_ref[t * B:(t + 1) * B, :] = h      # tile-aligned VMEM store
        if not last_layer:
            seq = seq_ref[...]                         # (T*B, H) next layer's input

    # Final FC on the last layer's last hidden state (== out[:, -1, :] @ fc).
    out_ref[...] = (
        jnp.dot(h, fcw_ref[...], preferred_element_type=jnp.float32) + fcb_ref[...]
    )


def lstm_pamap2_forward(x_btd, params):
    """x_btd: (B, T, input_size) batch-first, like the PyTorch module."""
    B, T, D = x_btd.shape
    H = params["lstm"][0]["w_hh"].shape[1]
    C = params["fc_w"].shape[0]
    num_layers = len(params["lstm"])

    # Pad batch to a full sublane tile so every per-timestep slab is aligned.
    Bp = max(8, -(-B // 8) * 8)
    x = jnp.transpose(x_btd, (1, 0, 2)).astype(jnp.float32)          # (T, B, D)
    x = jnp.pad(x, ((0, 0), (0, Bp - B), (0, 0)))                    # (T, Bp, D)
    x_flat = x.reshape(T * Bp, D)                                    # (T*Bp, D)

    inputs = [x_flat]
    for lp in params["lstm"]:
        inputs.append(lp["w_ih"].T.astype(jnp.float32))              # (D_l, 4H)
        inputs.append(lp["w_hh"].T.astype(jnp.float32))              # (H, 4H)
        inputs.append(
            (lp["b_ih"] + lp["b_hh"]).reshape(1, 4 * H).astype(jnp.float32))
    inputs.append(params["fc_w"].T.astype(jnp.float32))              # (H, C)
    inputs.append(params["fc_b"].reshape(1, C).astype(jnp.float32))  # (1, C)

    kernel = functools.partial(
        _fused_lstm_fc_kernel, T=T, B=Bp, H=H, num_layers=num_layers)

    out = pl.pallas_call(
        kernel,
        out_shape=jax.ShapeDtypeStruct((Bp, C), jnp.float32),
        in_specs=[pl.BlockSpec(a.shape, lambda: (0, 0)) for a in inputs],
        out_specs=pl.BlockSpec((Bp, C), lambda: (0, 0)),
        scratch_shapes=[pltpu.VMEM((T * Bp, H), jnp.float32)],
    )(*inputs)
    return out[:B]


def init_params(key, input_size, hidden_size, num_layers, num_classes):
    """Deterministic init mimicking PyTorch's U(-1/sqrt(H), 1/sqrt(H))."""
    k = 1.0 / math.sqrt(hidden_size)
    params = {"lstm": []}
    for layer in range(num_layers):
        d_in = input_size if layer == 0 else hidden_size
        key, k1, k2, k3, k4 = jax.random.split(key, 5)
        params["lstm"].append({
            "w_ih": jax.random.uniform(k1, (4 * hidden_size, d_in), jnp.float32, -k, k),
            "w_hh": jax.random.uniform(k2, (4 * hidden_size, hidden_size), jnp.float32, -k, k),
            "b_ih": jax.random.uniform(k3, (4 * hidden_size,), jnp.float32, -k, k),
            "b_hh": jax.random.uniform(k4, (4 * hidden_size,), jnp.float32, -k, k),
        })
    key, k1, k2 = jax.random.split(key, 3)
    params["fc_w"] = jax.random.uniform(k1, (num_classes, hidden_size), jnp.float32, -k, k)
    params["fc_b"] = jax.random.uniform(k2, (num_classes,), jnp.float32, -k, k)
    return params


def _reference_forward(x_btd, params):
    """Pure-jnp reference (same math) for a correctness cross-check."""
    h_seq = jnp.transpose(x_btd, (1, 0, 2)).astype(jnp.float32)      # (T, B, D)
    T, B, _ = h_seq.shape
    for lp in params["lstm"]:
        H = lp["w_hh"].shape[1]
        wih_t, whh_t = lp["w_ih"].T, lp["w_hh"].T
        bias = lp["b_ih"] + lp["b_hh"]
        h = jnp.zeros((B, H), jnp.float32)
        c = jnp.zeros((B, H), jnp.float32)
        outs = []
        for t in range(T):
            gates = h_seq[t] @ wih_t + h @ whh_t + bias
            i_g = jax.nn.sigmoid(gates[:, 0 * H:1 * H])
            f_g = jax.nn.sigmoid(gates[:, 1 * H:2 * H])
            g_g = jnp.tanh(gates[:, 2 * H:3 * H])
            o_g = jax.nn.sigmoid(gates[:, 3 * H:4 * H])
            c = f_g * c + i_g * g_g
            h = o_g * jnp.tanh(c)
            outs.append(h)
        h_seq = jnp.stack(outs)
    return h_seq[-1] @ params["fc_w"].T + params["fc_b"]


if __name__ == "__main__":
    # Small shapes consistent with the module's forward.
    B, T = 2, 8
    input_size, hidden_size, num_layers, num_classes = 16, 32, 2, 8

    key = jax.random.PRNGKey(0)
    key, kx = jax.random.split(key)
    x = jax.random.normal(kx, (B, T, input_size), jnp.float32)

    params = init_params(key, input_size, hidden_size, num_layers, num_classes)

    forward = jax.jit(lstm_pamap2_forward)
    out = jax.block_until_ready(forward(x, params))
    assert out.shape == (B, num_classes), out.shape

    ref = jax.block_until_ready(_reference_forward(x, params))
    assert jnp.allclose(out, ref, rtol=1e-2, atol=1e-2), (out, ref)

    print("KERNEL_OK")
</pallas_src>

<mosaic_0001>
module attributes {stable_mosaic.version = 11 : i64} {
  func.func @_fused_lstm_fc_kernel(%arg0: memref<64x16xf32, #tpu.memory_space<vmem>>, %arg1: memref<16x128xf32, #tpu.memory_space<vmem>>, %arg2: memref<32x128xf32, #tpu.memory_space<vmem>>, %arg3: memref<1x128xf32, #tpu.memory_space<vmem>>, %arg4: memref<32x128xf32, #tpu.memory_space<vmem>>, %arg5: memref<32x128xf32, #tpu.memory_space<vmem>>, %arg6: memref<1x128xf32, #tpu.memory_space<vmem>>, %arg7: memref<32x8xf32, #tpu.memory_space<vmem>>, %arg8: memref<1x8xf32, #tpu.memory_space<vmem>>, %arg9: memref<8x8xf32, #tpu.memory_space<vmem>>, %arg10: memref<64x32xf32, #tpu.memory_space<vmem>>) attributes {dimension_semantics = [], scalar_prefetch = 0 : i64, scratch_operands = 1 : i64, tpu.core_type = #tpu.core_type<tc>} {
    %c0 = arith.constant 0 : index
    %c0_0 = arith.constant 0 : index
    %0 = vector.load %arg0[%c0, %c0_0] : memref<64x16xf32, #tpu.memory_space<vmem>>, vector<64x16xf32>
    %c0_1 = arith.constant 0 : index
    %c0_2 = arith.constant 0 : index
    %1 = vector.load %arg1[%c0_1, %c0_2] : memref<16x128xf32, #tpu.memory_space<vmem>>, vector<16x128xf32>
    %c0_3 = arith.constant 0 : index
    %c0_4 = arith.constant 0 : index
    %2 = vector.load %arg2[%c0_3, %c0_4] : memref<32x128xf32, #tpu.memory_space<vmem>>, vector<32x128xf32>
    %c0_5 = arith.constant 0 : index
    %c0_6 = arith.constant 0 : index
    %3 = vector.load %arg3[%c0_5, %c0_6] : memref<1x128xf32, #tpu.memory_space<vmem>>, vector<1x128xf32>
    %cst = arith.constant dense<0.000000e+00> : vector<64x128xf32>
    %4 = tpu.matmul %0, %1, %cst {dimension_numbers = #tpu.dot_dimension_numbers<[1], [0], [0], [1], [0, 0, 1, 1], [], []>} : vector<64x16xf32>, vector<16x128xf32>, vector<64x128xf32> -> vector<64x128xf32>
    %5 = vector.broadcast %3 : vector<1x128xf32> to vector<64x128xf32>
    %6 = arith.addf %4, %5 : vector<64x128xf32>
    %cst_7 = arith.constant 0.000000e+00 : f32
    %7 = vector.broadcast %cst_7 : f32 to vector<8x32xf32>
    %cst_8 = arith.constant 0.000000e+00 : f32
    %8 = vector.broadcast %cst_8 : f32 to vector<8x32xf32>
    %9 = vector.extract_strided_slice %6 {offsets = [0, 0], sizes = [8, 128], strides = [1, 1]} : vector<64x128xf32> to vector<8x128xf32>
    %cst_9 = arith.constant dense<0.000000e+00> : vector<8x128xf32>
    %10 = tpu.matmul %7, %2, %cst_9 {dimension_numbers = #tpu.dot_dimension_numbers<[1], [0], [0], [1], [0, 0, 1, 1], [], []>} : vector<8x32xf32>, vector<32x128xf32>, vector<8x128xf32> -> vector<8x128xf32>
    %11 = arith.addf %9, %10 : vector<8x128xf32>
    %12 = arith.negf %11 : vector<8x128xf32>
    %13 = math.exp %12 : vector<8x128xf32>
    %cst_10 = arith.constant 1.000000e+00 : f32
    %14 = vector.broadcast %cst_10 : f32 to vector<8x128xf32>
    %15 = arith.addf %14, %13 : vector<8x128xf32>
    %16 = arith.divf %14, %15 : vector<8x128xf32>
    %17 = math.tanh %11 : vector<8x128xf32>
    %18 = vector.extract_strided_slice %16 {offsets = [0, 0], sizes = [8, 32], strides = [1, 1]} : vector<8x128xf32> to vector<8x32xf32>
    %19 = vector.extract_strided_slice %16 {offsets = [0, 32], sizes = [8, 32], strides = [1, 1]} : vector<8x128xf32> to vector<8x32xf32>
    %20 = vector.extract_strided_slice %17 {offsets = [0, 64], sizes = [8, 32], strides = [1, 1]} : vector<8x128xf32> to vector<8x32xf32>
    %21 = vector.extract_strided_slice %16 {offsets = [0, 96], sizes = [8, 32], strides = [1, 1]} : vector<8x128xf32> to vector<8x32xf32>
    %22 = arith.mulf %19, %8 : vector<8x32xf32>
    %23 = arith.mulf %18, %20 : vector<8x32xf32>
    %24 = arith.addf %22, %23 : vector<8x32xf32>
    %25 = math.tanh %24 : vector<8x32xf32>
    %26 = arith.mulf %21, %25 : vector<8x32xf32>
    %c0_11 = arith.constant 0 : index
    %c0_12 = arith.constant 0 : index
    %27 = vector.load %arg10[%c0_11, %c0_12] : memref<64x32xf32, #tpu.memory_space<vmem>>, vector<8x32xf32>
    tpu.vector_store %arg10[%c0_11, %c0_12], %26 {strides = array<i32>} : memref<64x32xf32, #tpu.memory_space<vmem>>, vector<8x32xf32>,
    %28 = vector.extract_strided_slice %6 {offsets = [8, 0], sizes = [8, 128], strides = [1, 1]} : vector<64x128xf32> to vector<8x128xf32>
    %cst_13 = arith.constant dense<0.000000e+00> : vector<8x128xf32>
    %29 = tpu.matmul %26, %2, %cst_13 {dimension_numbers = #tpu.dot_dimension_numbers<[1], [0], [0], [1], [0, 0, 1, 1], [], []>} : vector<8x32xf32>, vector<32x128xf32>, vector<8x128xf32> -> vector<8x128xf32>
    %30 = arith.addf %28, %29 : vector<8x128xf32>
    %31 = arith.negf %30 : vector<8x128xf32>
    %32 = math.exp %31 : vector<8x128xf32>
    %cst_14 = arith.constant 1.000000e+00 : f32
    %33 = vector.broadcast %cst_14 : f32 to vector<8x128xf32>
    %34 = arith.addf %33, %32 : vector<8x128xf32>
    %35 = arith.divf %33, %34 : vector<8x128xf32>
    %36 = math.tanh %30 : vector<8x128xf32>
    %37 = vector.extract_strided_slice %35 {offsets = [0, 0], sizes = [8, 32], strides = [1, 1]} : vector<8x128xf32> to vector<8x32xf32>
    %38 = vector.extract_strided_slice %35 {offsets = [0, 32], sizes = [8, 32], strides = [1, 1]} : vector<8x128xf32> to vector<8x32xf32>
    %39 = vector.extract_strided_slice %36 {offsets = [0, 64], sizes = [8, 32], strides = [1, 1]} : vector<8x128xf32> to vector<8x32xf32>
    %40 = vector.extract_strided_slice %35 {offsets = [0, 96], sizes = [8, 32], strides = [1, 1]} : vector<8x128xf32> to vector<8x32xf32>
    %41 = arith.mulf %38, %24 : vector<8x32xf32>
    %42 = arith.mulf %37, %39 : vector<8x32xf32>
    %43 = arith.addf %41, %42 : vector<8x32xf32>
    %44 = math.tanh %43 : vector<8x32xf32>
    %45 = arith.mulf %40, %44 : vector<8x32xf32>
    %c8 = arith.constant 8 : index
    %c0_15 = arith.constant 0 : index
    %46 = vector.load %arg10[%c8, %c0_15] : memref<64x32xf32, #tpu.memory_space<vmem>>, vector<8x32xf32>
    tpu.vector_store %arg10[%c8, %c0_15], %45 {strides = array<i32>} : memref<64x32xf32, #tpu.memory_space<vmem>>, vector<8x32xf32>,
    %47 = vector.extract_strided_slice %6 {offsets = [16, 0], sizes = [8, 128], strides = [1, 1]} : vector<64x128xf32> to vector<8x128xf32>
    %cst_16 = arith.constant dense<0.000000e+00> : vector<8x128xf32>
    %48 = tpu.matmul %45, %2, %cst_16 {dimension_numbers = #tpu.dot_dimension_numbers<[1], [0], [0], [1], [0, 0, 1, 1], [], []>} : vector<8x32xf32>, vector<32x128xf32>, vector<8x128xf32> -> vector<8x128xf32>
    %49 = arith.addf %47, %48 : vector<8x128xf32>
    %50 = arith.negf %49 : vector<8x128xf32>
    %51 = math.exp %50 : vector<8x128xf32>
    %cst_17 = arith.constant 1.000000e+00 : f32
    %52 = vector.broadcast %cst_17 : f32 to vector<8x128xf32>
    %53 = arith.addf %52, %51 : vector<8x128xf32>
    %54 = arith.divf %52, %53 : vector<8x128xf32>
    %55 = math.tanh %49 : vector<8x128xf32>
    %56 = vector.extract_strided_slice %54 {offsets = [0, 0], sizes = [8, 32], strides = [1, 1]} : vector<8x128xf32> to vector<8x32xf32>
    %57 = vector.extract_strided_slice %54 {offsets = [0, 32], sizes = [8, 32], strides = [1, 1]} : vector<8x128xf32> to vector<8x32xf32>
    %58 = vector.extract_strided_slice %55 {offsets = [0, 64], sizes = [8, 32], strides = [1, 1]} : vector<8x128xf32> to vector<8x32xf32>
    %59 = vector.extract_strided_slice %54 {offsets = [0, 96], sizes = [8, 32], strides = [1, 1]} : vector<8x128xf32> to vector<8x32xf32>
    %60 = arith.mulf %57, %43 : vector<8x32xf32>
    %61 = arith.mulf %56, %58 : vector<8x32xf32>
    %62 = arith.addf %60, %61 : vector<8x32xf32>
    %63 = math.tanh %62 : vector<8x32xf32>
    %64 = arith.mulf %59, %63 : vector<8x32xf32>
    %c16 = arith.constant 16 : index
    %c0_18 = arith.constant 0 : index
    %65 = vector.load %arg10[%c16, %c0_18] : memref<64x32xf32, #tpu.memory_space<vmem>>, vector<8x32xf32>
    tpu.vector_store %arg10[%c16, %c0_18], %64 {strides = array<i32>} : memref<64x32xf32, #tpu.memory_space<vmem>>, vector<8x32xf32>,
    %66 = vector.extract_strided_slice %6 {offsets = [24, 0], sizes = [8, 128], strides = [1, 1]} : vector<64x128xf32> to vector<8x128xf32>
    %cst_19 = arith.constant dense<0.000000e+00> : vector<8x128xf32>
    %67 = tpu.matmul %64, %2, %cst_19 {dimension_numbers = #tpu.dot_dimension_numbers<[1], [0], [0], [1], [0, 0, 1, 1], [], []>} : vector<8x32xf32>, vector<32x128xf32>, vector<8x128xf32> -> vector<8x128xf32>
    %68 = arith.addf %66, %67 : vector<8x128xf32>
    %69 = arith.negf %68 : vector<8x128xf32>
    %70 = math.exp %69 : vector<8x128xf32>
    %cst_20 = arith.constant 1.000000e+00 : f32
    %71 = vector.broadcast %cst_20 : f32 to vector<8x128xf32>
    %72 = arith.addf %71, %70 : vector<8x128xf32>
    %73 = arith.divf %71, %72 : vector<8x128xf32>
    %74 = math.tanh %68 : vector<8x128xf32>
    %75 = vector.extract_strided_slice %73 {offsets = [0, 0], sizes = [8, 32], strides = [1, 1]} : vector<8x128xf32> to vector<8x32xf32>
    %76 = vector.extract_strided_slice %73 {offsets = [0, 32], sizes = [8, 32], strides = [1, 1]} : vector<8x128xf32> to vector<8x32xf32>
    %77 = vector.extract_strided_slice %74 {offsets = [0, 64], sizes = [8, 32], strides = [1, 1]} : vector<8x128xf32> to vector<8x32xf32>
    %78 = vector.extract_strided_slice %73 {offsets = [0, 96], sizes = [8, 32], strides = [1, 1]} : vector<8x128xf32> to vector<8x32xf32>
    %79 = arith.mulf %76, %62 : vector<8x32xf32>
    %80 = arith.mulf %75, %77 : vector<8x32xf32>
    %81 = arith.addf %79, %80 : vector<8x32xf32>
    %82 = math.tanh %81 : vector<8x32xf32>
    %83 = arith.mulf %78, %82 : vector<8x32xf32>
    %c24 = arith.constant 24 : index
    %c0_21 = arith.constant 0 : index
    %84 = vector.load %arg10[%c24, %c0_21] : memref<64x32xf32, #tpu.memory_space<vmem>>, vector<8x32xf32>
    tpu.vector_store %arg10[%c24, %c0_21], %83 {strides = array<i32>} : memref<64x32xf32, #tpu.memory_space<vmem>>, vector<8x32xf32>,
    %85 = vector.extract_strided_slice %6 {offsets = [32, 0], sizes = [8, 128], strides = [1, 1]} : vector<64x128xf32> to vector<8x128xf32>
    %cst_22 = arith.constant dense<0.000000e+00> : vector<8x128xf32>
    %86 = tpu.matmul %83, %2, %cst_22 {dimension_numbers = #tpu.dot_dimension_numbers<[1], [0], [0], [1], [0, 0, 1, 1], [], []>} : vector<8x32xf32>, vector<32x128xf32>, vector<8x128xf32> -> vector<8x128xf32>
    %87 = arith.addf %85, %86 : vector<8x128xf32>
    %88 = arith.negf %87 : vector<8x128xf32>
    %89 = math.exp %88 : vector<8x128xf32>
    %cst_23 = arith.constant 1.000000e+00 : f32
    %90 = vector.broadcast %cst_23 : f32 to vector<8x128xf32>
    %91 = arith.addf %90, %89 : vector<8x128xf32>
    %92 = arith.divf %90, %91 : vector<8x128xf32>
    %93 = math.tanh %87 : vector<8x128xf32>
    %94 = vector.extract_strided_slice %92 {offsets = [0, 0], sizes = [8, 32], strides = [1, 1]} : vector<8x128xf32> to vector<8x32xf32>
    %95 = vector.extract_strided_slice %92 {offsets = [0, 32], sizes = [8, 32], strides = [1, 1]} : vector<8x128xf32> to vector<8x32xf32>
    %96 = vector.extract_strided_slice %93 {offsets = [0, 64], sizes = [8, 32], strides = [1, 1]} : vector<8x128xf32> to vector<8x32xf32>
    %97 = vector.extract_strided_slice %92 {offsets = [0, 96], sizes = [8, 32], strides = [1, 1]} : vector<8x128xf32> to vector<8x32xf32>
    %98 = arith.mulf %95, %81 : vector<8x32xf32>
    %99 = arith.mulf %94, %96 : vector<8x32xf32>
    %100 = arith.addf %98, %99 : vector<8x32xf32>
    %101 = math.tanh %100 : vector<8x32xf32>
    %102 = arith.mulf %97, %101 : vector<8x32xf32>
    %c32 = arith.constant 32 : index
    %c0_24 = arith.constant 0 : index
    %103 = vector.load %arg10[%c32, %c0_24] : memref<64x32xf32, #tpu.memory_space<vmem>>, vector<8x32xf32>
    tpu.vector_store %arg10[%c32, %c0_24], %102 {strides = array<i32>} : memref<64x32xf32, #tpu.memory_space<vmem>>, vector<8x32xf32>,
    %104 = vector.extract_strided_slice %6 {offsets = [40, 0], sizes = [8, 128], strides = [1, 1]} : vector<64x128xf32> to vector<8x128xf32>
    %cst_25 = arith.constant dense<0.000000e+00> : vector<8x128xf32>
    %105 = tpu.matmul %102, %2, %cst_25 {dimension_numbers = #tpu.dot_dimension_numbers<[1], [0], [0], [1], [0, 0, 1, 1], [], []>} : vector<8x32xf32>, vector<32x128xf32>, vector<8x128xf32> -> vector<8x128xf32>
    %106 = arith.addf %104, %105 : vector<8x128xf32>
    %107 = arith.negf %106 : vector<8x128xf32>
    %108 = math.exp %107 : vector<8x128xf32>
    %cst_26 = arith.constant 1.000000e+00 : f32
    %109 = vector.broadcast %cst_26 : f32 to vector<8x128xf32>
    %110 = arith.addf %109, %108 : vector<8x128xf32>
    %111 = arith.divf %109, %110 : vector<8x128xf32>
    %112 = math.tanh %106 : vector<8x128xf32>
    %113 = vector.extract_strided_slice %111 {offsets = [0, 0], sizes = [8, 32], strides = [1, 1]} : vector<8x128xf32> to vector<8x32xf32>
    %114 = vector.extract_strided_slice %111 {offsets = [0, 32], sizes = [8, 32], strides = [1, 1]} : vector<8x128xf32> to vector<8x32xf32>
    %115 = vector.extract_strided_slice %112 {offsets = [0, 64], sizes = [8, 32], strides = [1, 1]} : vector<8x128xf32> to vector<8x32xf32>
    %116 = vector.extract_strided_slice %111 {offsets = [0, 96], sizes = [8, 32], strides = [1, 1]} : vector<8x128xf32> to vector<8x32xf32>
    %117 = arith.mulf %114, %100 : vector<8x32xf32>
    %118 = arith.mulf %113, %115 : vector<8x32xf32>
    %119 = arith.addf %117, %118 : vector<8x32xf32>
    %120 = math.tanh %119 : vector<8x32xf32>
    %121 = arith.mulf %116, %120 : vector<8x32xf32>
    %c40 = arith.constant 40 : index
    %c0_27 = arith.constant 0 : index
    %122 = vector.load %arg10[%c40, %c0_27] : memref<64x32xf32, #tpu.memory_space<vmem>>, vector<8x32xf32>
    tpu.vector_store %arg10[%c40, %c0_27], %121 {strides = array<i32>} : memref<64x32xf32, #tpu.memory_space<vmem>>, vector<8x32xf32>,
    %123 = vector.extract_strided_slice %6 {offsets = [48, 0], sizes = [8, 128], strides = [1, 1]} : vector<64x128xf32> to vector<8x128xf32>
    %cst_28 = arith.constant dense<0.000000e+00> : vector<8x128xf32>
    %124 = tpu.matmul %121, %2, %cst_28 {dimension_numbers = #tpu.dot_dimension_numbers<[1], [0], [0], [1], [0, 0, 1, 1], [], []>} : vector<8x32xf32>, vector<32x128xf32>, vector<8x128xf32> -> vector<8x128xf32>
    %125 = arith.addf %123, %124 : vector<8x128xf32>
    %126 = arith.negf %125 : vector<8x128xf32>
    %127 = math.exp %126 : vector<8x128xf32>
    %cst_29 = arith.constant 1.000000e+00 : f32
    %128 = vector.broadcast %cst_29 : f32 to vector<8x128xf32>
    %129 = arith.addf %128, %127 : vector<8x128xf32>
    %130 = arith.divf %128, %129 : vector<8x128xf32>
    %131 = math.tanh %125 : vector<8x128xf32>
    %132 = vector.extract_strided_slice %130 {offsets = [0, 0], sizes = [8, 32], strides = [1, 1]} : vector<8x128xf32> to vector<8x32xf32>
    %133 = vector.extract_strided_slice %130 {offsets = [0, 32], sizes = [8, 32], strides = [1, 1]} : vector<8x128xf32> to vector<8x32xf32>
    %134 = vector.extract_strided_slice %131 {offsets = [0, 64], sizes = [8, 32], strides = [1, 1]} : vector<8x128xf32> to vector<8x32xf32>
    %135 = vector.extract_strided_slice %130 {offsets = [0, 96], sizes = [8, 32], strides = [1, 1]} : vector<8x128xf32> to vector<8x32xf32>
    %136 = arith.mulf %133, %119 : vector<8x32xf32>
    %137 = arith.mulf %132, %134 : vector<8x32xf32>
    %138 = arith.addf %136, %137 : vector<8x32xf32>
    %139 = math.tanh %138 : vector<8x32xf32>
    %140 = arith.mulf %135, %139 : vector<8x32xf32>
    %c48 = arith.constant 48 : index
    %c0_30 = arith.constant 0 : index
    %141 = vector.load %arg10[%c48, %c0_30] : memref<64x32xf32, #tpu.memory_space<vmem>>, vector<8x32xf32>
    tpu.vector_store %arg10[%c48, %c0_30], %140 {strides = array<i32>} : memref<64x32xf32, #tpu.memory_space<vmem>>, vector<8x32xf32>,
    %142 = vector.extract_strided_slice %6 {offsets = [56, 0], sizes = [8, 128], strides = [1, 1]} : vector<64x128xf32> to vector<8x128xf32>
    %cst_31 = arith.constant dense<0.000000e+00> : vector<8x128xf32>
    %143 = tpu.matmul %140, %2, %cst_31 {dimension_numbers = #tpu.dot_dimension_numbers<[1], [0], [0], [1], [0, 0, 1, 1], [], []>} : vector<8x32xf32>, vector<32x128xf32>, vector<8x128xf32> -> vector<8x128xf32>
    %144 = arith.addf %142, %143 : vector<8x128xf32>
    %145 = arith.negf %144 : vector<8x128xf32>
    %146 = math.exp %145 : vector<8x128xf32>
    %cst_32 = arith.constant 1.000000e+00 : f32
    %147 = vector.broadcast %cst_32 : f32 to vector<8x128xf32>
    %148 = arith.addf %147, %146 : vector<8x128xf32>
    %149 = arith.divf %147, %148 : vector<8x128xf32>
    %150 = math.tanh %144 : vector<8x128xf32>
    %151 = vector.extract_strided_slice %149 {offsets = [0, 0], sizes = [8, 32], strides = [1, 1]} : vector<8x128xf32> to vector<8x32xf32>
    %152 = vector.extract_strided_slice %149 {offsets = [0, 32], sizes = [8, 32], strides = [1, 1]} : vector<8x128xf32> to vector<8x32xf32>
    %153 = vector.extract_strided_slice %150 {offsets = [0, 64], sizes = [8, 32], strides = [1, 1]} : vector<8x128xf32> to vector<8x32xf32>
    %154 = vector.extract_strided_slice %149 {offsets = [0, 96], sizes = [8, 32], strides = [1, 1]} : vector<8x128xf32> to vector<8x32xf32>
    %155 = arith.mulf %152, %138 : vector<8x32xf32>
    %156 = arith.mulf %151, %153 : vector<8x32xf32>
    %157 = arith.addf %155, %156 : vector<8x32xf32>
    %158 = math.tanh %157 : vector<8x32xf32>
    %159 = arith.mulf %154, %158 : vector<8x32xf32>
    %c56 = arith.constant 56 : index
    %c0_33 = arith.constant 0 : index
    %160 = vector.load %arg10[%c56, %c0_33] : memref<64x32xf32, #tpu.memory_space<vmem>>, vector<8x32xf32>
    tpu.vector_store %arg10[%c56, %c0_33], %159 {strides = array<i32>} : memref<64x32xf32, #tpu.memory_space<vmem>>, vector<8x32xf32>,
    %c0_34 = arith.constant 0 : index
    %c0_35 = arith.constant 0 : index
    %161 = vector.load %arg10[%c0_34, %c0_35] : memref<64x32xf32, #tpu.memory_space<vmem>>, vector<64x32xf32>
    %c0_36 = arith.constant 0 : index
    %c0_37 = arith.constant 0 : index
    %162 = vector.load %arg4[%c0_36, %c0_37] : memref<32x128xf32, #tpu.memory_space<vmem>>, vector<32x128xf32>
    %c0_38 = arith.constant 0 : index
    %c0_39 = arith.constant 0 : index
    %163 = vector.load %arg5[%c0_38, %c0_39] : memref<32x128xf32, #tpu.memory_space<vmem>>, vector<32x128xf32>
    %c0_40 = arith.constant 0 : index
    %c0_41 = arith.constant 0 : index
    %164 = vector.load %arg6[%c0_40, %c0_41] : memref<1x128xf32, #tpu.memory_space<vmem>>, vector<1x128xf32>
    %cst_42 = arith.constant dense<0.000000e+00> : vector<64x128xf32>
    %165 = tpu.matmul %161, %162, %cst_42 {dimension_numbers = #tpu.dot_dimension_numbers<[1], [0], [0], [1], [0, 0, 1, 1], [], []>} : vector<64x32xf32>, vector<32x128xf32>, vector<64x128xf32> -> vector<64x128xf32>
    %166 = vector.broadcast %164 : vector<1x128xf32> to vector<64x128xf32>
    %167 = arith.addf %165, %166 : vector<64x128xf32>
    %cst_43 = arith.constant 0.000000e+00 : f32
    %168 = vector.broadcast %cst_43 : f32 to vector<8x32xf32>
    %cst_44 = arith.constant 0.000000e+00 : f32
    %169 = vector.broadcast %cst_44 : f32 to vector<8x32xf32>
    %170 = vector.extract_strided_slice %167 {offsets = [0, 0], sizes = [8, 128], strides = [1, 1]} : vector<64x128xf32> to vector<8x128xf32>
    %cst_45 = arith.constant dense<0.000000e+00> : vector<8x128xf32>
    %171 = tpu.matmul %168, %163, %cst_45 {dimension_numbers = #tpu.dot_dimension_numbers<[1], [0], [0], [1], [0, 0, 1, 1], [], []>} : vector<8x32xf32>, vector<32x128xf32>, vector<8x128xf32> -> vector<8x128xf32>
    %172 = arith.addf %170, %171 : vector<8x128xf32>
    %173 = arith.negf %172 : vector<8x128xf32>
    %174 = math.exp %173 : vector<8x128xf32>
    %cst_46 = arith.constant 1.000000e+00 : f32
    %175 = vector.broadcast %cst_46 : f32 to vector<8x128xf32>
    %176 = arith.addf %175, %174 : vector<8x128xf32>
    %177 = arith.divf %175, %176 : vector<8x128xf32>
    %178 = math.tanh %172 : vector<8x128xf32>
    %179 = vector.extract_strided_slice %177 {offsets = [0, 0], sizes = [8, 32], strides = [1, 1]} : vector<8x128xf32> to vector<8x32xf32>
    %180 = vector.extract_strided_slice %177 {offsets = [0, 32], sizes = [8, 32], strides = [1, 1]} : vector<8x128xf32> to vector<8x32xf32>
    %181 = vector.extract_strided_slice %178 {offsets = [0, 64], sizes = [8, 32], strides = [1, 1]} : vector<8x128xf32> to vector<8x32xf32>
    %182 = vector.extract_strided_slice %177 {offsets = [0, 96], sizes = [8, 32], strides = [1, 1]} : vector<8x128xf32> to vector<8x32xf32>
    %183 = arith.mulf %180, %169 : vector<8x32xf32>
    %184 = arith.mulf %179, %181 : vector<8x32xf32>
    %185 = arith.addf %183, %184 : vector<8x32xf32>
    %186 = math.tanh %185 : vector<8x32xf32>
    %187 = arith.mulf %182, %186 : vector<8x32xf32>
    %188 = vector.extract_strided_slice %167 {offsets = [8, 0], sizes = [8, 128], strides = [1, 1]} : vector<64x128xf32> to vector<8x128xf32>
    %cst_47 = arith.constant dense<0.000000e+00> : vector<8x128xf32>
    %189 = tpu.matmul %187, %163, %cst_47 {dimension_numbers = #tpu.dot_dimension_numbers<[1], [0], [0], [1], [0, 0, 1, 1], [], []>} : vector<8x32xf32>, vector<32x128xf32>, vector<8x128xf32> -> vector<8x128xf32>
    %190 = arith.addf %188, %189 : vector<8x128xf32>
    %191 = arith.negf %190 : vector<8x128xf32>
    %192 = math.exp %191 : vector<8x128xf32>
    %cst_48 = arith.constant 1.000000e+00 : f32
    %193 = vector.broadcast %cst_48 : f32 to vector<8x128xf32>
    %194 = arith.addf %193, %192 : vector<8x128xf32>
    %195 = arith.divf %193, %194 : vector<8x128xf32>
    %196 = math.tanh %190 : vector<8x128xf32>
    %197 = vector.extract_strided_slice %195 {offsets = [0, 0], sizes = [8, 32], strides = [1, 1]} : vector<8x128xf32> to vector<8x32xf32>
    %198 = vector.extract_strided_slice %195 {offsets = [0, 32], sizes = [8, 32], strides = [1, 1]} : vector<8x128xf32> to vector<8x32xf32>
    %199 = vector.extract_strided_slice %196 {offsets = [0, 64], sizes = [8, 32], strides = [1, 1]} : vector<8x128xf32> to vector<8x32xf32>
    %200 = vector.extract_strided_slice %195 {offsets = [0, 96], sizes = [8, 32], strides = [1, 1]} : vector<8x128xf32> to vector<8x32xf32>
    %201 = arith.mulf %198, %185 : vector<8x32xf32>
    %202 = arith.mulf %197, %199 : vector<8x32xf32>
    %203 = arith.addf %201, %202 : vector<8x32xf32>
    %204 = math.tanh %203 : vector<8x32xf32>
    %205 = arith.mulf %200, %204 : vector<8x32xf32>
    %206 = vector.extract_strided_slice %167 {offsets = [16, 0], sizes = [8, 128], strides = [1, 1]} : vector<64x128xf32> to vector<8x128xf32>
    %cst_49 = arith.constant dense<0.000000e+00> : vector<8x128xf32>
    %207 = tpu.matmul %205, %163, %cst_49 {dimension_numbers = #tpu.dot_dimension_numbers<[1], [0], [0], [1], [0, 0, 1, 1], [], []>} : vector<8x32xf32>, vector<32x128xf32>, vector<8x128xf32> -> vector<8x128xf32>
    %208 = arith.addf %206, %207 : vector<8x128xf32>
    %209 = arith.negf %208 : vector<8x128xf32>
    %210 = math.exp %209 : vector<8x128xf32>
    %cst_50 = arith.constant 1.000000e+00 : f32
    %211 = vector.broadcast %cst_50 : f32 to vector<8x128xf32>
    %212 = arith.addf %211, %210 : vector<8x128xf32>
    %213 = arith.divf %211, %212 : vector<8x128xf32>
    %214 = math.tanh %208 : vector<8x128xf32>
    %215 = vector.extract_strided_slice %213 {offsets = [0, 0], sizes = [8, 32], strides = [1, 1]} : vector<8x128xf32> to vector<8x32xf32>
    %216 = vector.extract_strided_slice %213 {offsets = [0, 32], sizes = [8, 32], strides = [1, 1]} : vector<8x128xf32> to vector<8x32xf32>
    %217 = vector.extract_strided_slice %214 {offsets = [0, 64], sizes = [8, 32], strides = [1, 1]} : vector<8x128xf32> to vector<8x32xf32>
    %218 = vector.extract_strided_slice %213 {offsets = [0, 96], sizes = [8, 32], strides = [1, 1]} : vector<8x128xf32> to vector<8x32xf32>
    %219 = arith.mulf %216, %203 : vector<8x32xf32>
    %220 = arith.mulf %215, %217 : vector<8x32xf32>
    %221 = arith.addf %219, %220 : vector<8x32xf32>
    %222 = math.tanh %221 : vector<8x32xf32>
    %223 = arith.mulf %218, %222 : vector<8x32xf32>
    %224 = vector.extract_strided_slice %167 {offsets = [24, 0], sizes = [8, 128], strides = [1, 1]} : vector<64x128xf32> to vector<8x128xf32>
    %cst_51 = arith.constant dense<0.000000e+00> : vector<8x128xf32>
    %225 = tpu.matmul %223, %163, %cst_51 {dimension_numbers = #tpu.dot_dimension_numbers<[1], [0], [0], [1], [0, 0, 1, 1], [], []>} : vector<8x32xf32>, vector<32x128xf32>, vector<8x128xf32> -> vector<8x128xf32>
    %226 = arith.addf %224, %225 : vector<8x128xf32>
    %227 = arith.negf %226 : vector<8x128xf32>
    %228 = math.exp %227 : vector<8x128xf32>
    %cst_52 = arith.constant 1.000000e+00 : f32
    %229 = vector.broadcast %cst_52 : f32 to vector<8x128xf32>
    %230 = arith.addf %229, %228 : vector<8x128xf32>
    %231 = arith.divf %229, %230 : vector<8x128xf32>
    %232 = math.tanh %226 : vector<8x128xf32>
    %233 = vector.extract_strided_slice %231 {offsets = [0, 0], sizes = [8, 32], strides = [1, 1]} : vector<8x128xf32> to vector<8x32xf32>
    %234 = vector.extract_strided_slice %231 {offsets = [0, 32], sizes = [8, 32], strides = [1, 1]} : vector<8x128xf32> to vector<8x32xf32>
    %235 = vector.extract_strided_slice %232 {offsets = [0, 64], sizes = [8, 32], strides = [1, 1]} : vector<8x128xf32> to vector<8x32xf32>
    %236 = vector.extract_strided_slice %231 {offsets = [0, 96], sizes = [8, 32], strides = [1, 1]} : vector<8x128xf32> to vector<8x32xf32>
    %237 = arith.mulf %234, %221 : vector<8x32xf32>
    %238 = arith.mulf %233, %235 : vector<8x32xf32>
    %239 = arith.addf %237, %238 : vector<8x32xf32>
    %240 = math.tanh %239 : vector<8x32xf32>
    %241 = arith.mulf %236, %240 : vector<8x32xf32>
    %242 = vector.extract_strided_slice %167 {offsets = [32, 0], sizes = [8, 128], strides = [1, 1]} : vector<64x128xf32> to vector<8x128xf32>
    %cst_53 = arith.constant dense<0.000000e+00> : vector<8x128xf32>
    %243 = tpu.matmul %241, %163, %cst_53 {dimension_numbers = #tpu.dot_dimension_numbers<[1], [0], [0], [1], [0, 0, 1, 1], [], []>} : vector<8x32xf32>, vector<32x128xf32>, vector<8x128xf32> -> vector<8x128xf32>
    %244 = arith.addf %242, %243 : vector<8x128xf32>
    %245 = arith.negf %244 : vector<8x128xf32>
    %246 = math.exp %245 : vector<8x128xf32>
    %cst_54 = arith.constant 1.000000e+00 : f32
    %247 = vector.broadcast %cst_54 : f32 to vector<8x128xf32>
    %248 = arith.addf %247, %246 : vector<8x128xf32>
    %249 = arith.divf %247, %248 : vector<8x128xf32>
    %250 = math.tanh %244 : vector<8x128xf32>
    %251 = vector.extract_strided_slice %249 {offsets = [0, 0], sizes = [8, 32], strides = [1, 1]} : vector<8x128xf32> to vector<8x32xf32>
    %252 = vector.extract_strided_slice %249 {offsets = [0, 32], sizes = [8, 32], strides = [1, 1]} : vector<8x128xf32> to vector<8x32xf32>
    %253 = vector.extract_strided_slice %250 {offsets = [0, 64], sizes = [8, 32], strides = [1, 1]} : vector<8x128xf32> to vector<8x32xf32>
    %254 = vector.extract_strided_slice %249 {offsets = [0, 96], sizes = [8, 32], strides = [1, 1]} : vector<8x128xf32> to vector<8x32xf32>
    %255 = arith.mulf %252, %239 : vector<8x32xf32>
    %256 = arith.mulf %251, %253 : vector<8x32xf32>
    %257 = arith.addf %255, %256 : vector<8x32xf32>
    %258 = math.tanh %257 : vector<8x32xf32>
    %259 = arith.mulf %254, %258 : vector<8x32xf32>
    %260 = vector.extract_strided_slice %167 {offsets = [40, 0], sizes = [8, 128], strides = [1, 1]} : vector<64x128xf32> to vector<8x128xf32>
    %cst_55 = arith.constant dense<0.000000e+00> : vector<8x128xf32>
    %261 = tpu.matmul %259, %163, %cst_55 {dimension_numbers = #tpu.dot_dimension_numbers<[1], [0], [0], [1], [0, 0, 1, 1], [], []>} : vector<8x32xf32>, vector<32x128xf32>, vector<8x128xf32> -> vector<8x128xf32>
    %262 = arith.addf %260, %261 : vector<8x128xf32>
    %263 = arith.negf %262 : vector<8x128xf32>
    %264 = math.exp %263 : vector<8x128xf32>
    %cst_56 = arith.constant 1.000000e+00 : f32
    %265 = vector.broadcast %cst_56 : f32 to vector<8x128xf32>
    %266 = arith.addf %265, %264 : vector<8x128xf32>
    %267 = arith.divf %265, %266 : vector<8x128xf32>
    %268 = math.tanh %262 : vector<8x128xf32>
    %269 = vector.extract_strided_slice %267 {offsets = [0, 0], sizes = [8, 32], strides = [1, 1]} : vector<8x128xf32> to vector<8x32xf32>
    %270 = vector.extract_strided_slice %267 {offsets = [0, 32], sizes = [8, 32], strides = [1, 1]} : vector<8x128xf32> to vector<8x32xf32>
    %271 = vector.extract_strided_slice %268 {offsets = [0, 64], sizes = [8, 32], strides = [1, 1]} : vector<8x128xf32> to vector<8x32xf32>
    %272 = vector.extract_strided_slice %267 {offsets = [0, 96], sizes = [8, 32], strides = [1, 1]} : vector<8x128xf32> to vector<8x32xf32>
    %273 = arith.mulf %270, %257 : vector<8x32xf32>
    %274 = arith.mulf %269, %271 : vector<8x32xf32>
    %275 = arith.addf %273, %274 : vector<8x32xf32>
    %276 = math.tanh %275 : vector<8x32xf32>
    %277 = arith.mulf %272, %276 : vector<8x32xf32>
    %278 = vector.extract_strided_slice %167 {offsets = [48, 0], sizes = [8, 128], strides = [1, 1]} : vector<64x128xf32> to vector<8x128xf32>
    %cst_57 = arith.constant dense<0.000000e+00> : vector<8x128xf32>
    %279 = tpu.matmul %277, %163, %cst_57 {dimension_numbers = #tpu.dot_dimension_numbers<[1], [0], [0], [1], [0, 0, 1, 1], [], []>} : vector<8x32xf32>, vector<32x128xf32>, vector<8x128xf32> -> vector<8x128xf32>
    %280 = arith.addf %278, %279 : vector<8x128xf32>
    %281 = arith.negf %280 : vector<8x128xf32>
    %282 = math.exp %281 : vector<8x128xf32>
    %cst_58 = arith.constant 1.000000e+00 : f32
    %283 = vector.broadcast %cst_58 : f32 to vector<8x128xf32>
    %284 = arith.addf %283, %282 : vector<8x128xf32>
    %285 = arith.divf %283, %284 : vector<8x128xf32>
    %286 = math.tanh %280 : vector<8x128xf32>
    %287 = vector.extract_strided_slice %285 {offsets = [0, 0], sizes = [8, 32], strides = [1, 1]} : vector<8x128xf32> to vector<8x32xf32>
    %288 = vector.extract_strided_slice %285 {offsets = [0, 32], sizes = [8, 32], strides = [1, 1]} : vector<8x128xf32> to vector<8x32xf32>
    %289 = vector.extract_strided_slice %286 {offsets = [0, 64], sizes = [8, 32], strides = [1, 1]} : vector<8x128xf32> to vector<8x32xf32>
    %290 = vector.extract_strided_slice %285 {offsets = [0, 96], sizes = [8, 32], strides = [1, 1]} : vector<8x128xf32> to vector<8x32xf32>
    %291 = arith.mulf %288, %275 : vector<8x32xf32>
    %292 = arith.mulf %287, %289 : vector<8x32xf32>
    %293 = arith.addf %291, %292 : vector<8x32xf32>
    %294 = math.tanh %293 : vector<8x32xf32>
    %295 = arith.mulf %290, %294 : vector<8x32xf32>
    %296 = vector.extract_strided_slice %167 {offsets = [56, 0], sizes = [8, 128], strides = [1, 1]} : vector<64x128xf32> to vector<8x128xf32>
    %cst_59 = arith.constant dense<0.000000e+00> : vector<8x128xf32>
    %297 = tpu.matmul %295, %163, %cst_59 {dimension_numbers = #tpu.dot_dimension_numbers<[1], [0], [0], [1], [0, 0, 1, 1], [], []>} : vector<8x32xf32>, vector<32x128xf32>, vector<8x128xf32> -> vector<8x128xf32>
    %298 = arith.addf %296, %297 : vector<8x128xf32>
    %299 = arith.negf %298 : vector<8x128xf32>
    %300 = math.exp %299 : vector<8x128xf32>
    %cst_60 = arith.constant 1.000000e+00 : f32
    %301 = vector.broadcast %cst_60 : f32 to vector<8x128xf32>
    %302 = arith.addf %301, %300 : vector<8x128xf32>
    %303 = arith.divf %301, %302 : vector<8x128xf32>
    %304 = math.tanh %298 : vector<8x128xf32>
    %305 = vector.extract_strided_slice %303 {offsets = [0, 0], sizes = [8, 32], strides = [1, 1]} : vector<8x128xf32> to vector<8x32xf32>
    %306 = vector.extract_strided_slice %303 {offsets = [0, 32], sizes = [8, 32], strides = [1, 1]} : vector<8x128xf32> to vector<8x32xf32>
    %307 = vector.extract_strided_slice %304 {offsets = [0, 64], sizes = [8, 32], strides = [1, 1]} : vector<8x128xf32> to vector<8x32xf32>
    %308 = vector.extract_strided_slice %303 {offsets = [0, 96], sizes = [8, 32], strides = [1, 1]} : vector<8x128xf32> to vector<8x32xf32>
    %309 = arith.mulf %306, %293 : vector<8x32xf32>
    %310 = arith.mulf %305, %307 : vector<8x32xf32>
    %311 = arith.addf %309, %310 : vector<8x32xf32>
    %312 = math.tanh %311 : vector<8x32xf32>
    %313 = arith.mulf %308, %312 : vector<8x32xf32>
    %c0_61 = arith.constant 0 : index
    %c0_62 = arith.constant 0 : index
    %314 = vector.load %arg7[%c0_61, %c0_62] : memref<32x8xf32, #tpu.memory_space<vmem>>, vector<32x8xf32>
    %cst_63 = arith.constant dense<0.000000e+00> : vector<8x8xf32>
    %315 = tpu.matmul %313, %314, %cst_63 {dimension_numbers = #tpu.dot_dimension_numbers<[1], [0], [0], [1], [0, 0, 1, 1], [], []>} : vector<8x32xf32>, vector<32x8xf32>, vector<8x8xf32> -> vector<8x8xf32>
    %c0_64 = arith.constant 0 : index
    %c0_65 = arith.constant 0 : index
    %316 = vector.load %arg8[%c0_64, %c0_65] : memref<1x8xf32, #tpu.memory_space<vmem>>, vector<1x8xf32>
    %317 = vector.broadcast %316 : vector<1x8xf32> to vector<8x8xf32>
    %318 = arith.addf %315, %317 : vector<8x8xf32>
    %c0_66 = arith.constant 0 : index
    %c0_67 = arith.constant 0 : index
    %319 = vector.load %arg9[%c0_66, %c0_67] : memref<8x8xf32, #tpu.memory_space<vmem>>, vector<8x8xf32>
    tpu.vector_store %arg9[%c0_66, %c0_67], %318 {strides = array<i32>} : memref<8x8xf32, #tpu.memory_space<vmem>>, vector<8x8xf32>,
    return
  }
}

</mosaic_0001>

<bundles_post_ra>
// kernel: lstm_pamap2_forward.1
= control target key start
LH: loop header
LB: loop body
LE: loop exit
PB: predicated region body
PF: predicated region fallthrough
CT: control target
= control target key end

     0   :  { %v2552_v0 = vmov 0.0   ;;  %vm2553_vm0 = vmmov 0   ;;  %vm53_vm1 = vcmask 130048   ;;  %s2554_s25 = smov 64   ;;  %vm183_vm2 = vcmask 261120   ;;  %s3034_s1 = inlined_call_operand.vmem [shape: f32[16,128], index: 1, kind: input, shape index: {}]   ;;  %s3035_s2 = inlined_call_operand.vmem [shape: f32[32,128], index: 2, kind: input, shape index: {}]   ;;  %s3036_s0 = inlined_call_operand.vmem [shape: f32[64,16], index: 0, kind: input, shape index: {}]   ;;  %s3037_s3 = inlined_call_operand.vmem [shape: f32[1,128], index: 3, kind: input, shape index: {}]   ;;  %s3038_s4 = inlined_call_operand.vmem [shape: f32[32,128], index: 4, kind: input, shape index: {}]   ;;  %s3039_s5 = inlined_call_operand.vmem [shape: f32[32,128], index: 5, kind: input, shape index: {}]   ;;  %s3040_s6 = inlined_call_operand.vmem [shape: f32[1,128], index: 6, kind: input, shape index: {}]   ;;  %s3041_s7 = inlined_call_operand.vmem [shape: f32[32,8], index: 7, kind: input, shape index: {}]   ;;  %s3042_s8 = inlined_call_operand.vmem [shape: f32[1,8], index: 8, kind: input, shape index: {}]   ;;  %s3043_s9 = inlined_call_operand.vmem [shape: f32[8,8], index: 9, kind: output, shape index: {}]  }
   0x1   :  { %2213 = vmatprep.subr.mxu1 %v2552_v0  ;;  %v41_v1 = vld [vmem:[%s3034_s1 + $0x8] sm:$0xff]  ;;  %v2613_v2 = vld [vmem:[%s3035_s2 + $0x18] sm:$0xff]  ;;  %v40_v3 = vld [vmem:[%s3034_s1] sm:$0xff]  ;;  %2221 = vmatprep.mubr.msk.f32.mxu1 %vm2553_vm0, %v2552_v0  ;;  %vm2034_vm3 = vcmask 64512  }
   0x2   :  { %2197 = vmatprep.subr.mxu0 %v41_v1  ;;  %2214 = vmatpush3.msra.mxu1 %v2613_v2  ;;  %v2624_v4 = vld [vmem:[%s3035_s2 + $0x10] sm:$0xff]  ;;  %v32_v5 = vld [vmem:[%s3036_s0] sm:$0xff]  ;;  %v33_v6 = vld [vmem:[%s3036_s0 + $0x8] sm:$0xff] }
   0x3   :  { %2198 = vmatpush3.msra.mxu0 %v41_v1  ;;  %2215 = vmatprep.subr.mxu1 %v2552_v0  ;;  %v2637_v7 = vld [vmem:[%s3035_s2 + $0x8] sm:$0xff]  ;;  %v2645_v8 = vld [vmem:[%s3035_s2] sm:$0xff]  ;;  %v34_v44 = vld [vmem:[%s3036_s0 + $0x10] sm:$0xff] }
   0x4   :  { %2199 = vmatprep.subr.mxu0 %v40_v3  ;;  %2216 = vmatpush3.msra.mxu1 %v2624_v4  ;;  %v2674_v10 = vld [vmem:[%s3037_s3] ss:$0 sm:$0xff]  ;;  %s2555_s3 = smov 32   ;;  %v35_v45 = vld [vmem:[%s3036_s0 + $0x18] sm:$0xff]  ;;  %v37_v47 = vld [vmem:[%s3036_s0 + $0x28] sm:$0xff] }
   0x5   :  { %2200 = vmatpush3.msra.mxu0 %v40_v3  ;;  %2201 = vmatprep.mubr.msk.f32.mxu0 %vm53_vm1, %v32_v5  ;;  %v36_v46 = vld [vmem:[%s3036_s0 + $0x20] sm:$0xff]  ;;  %v38_v48 = vld [vmem:[%s3036_s0 + $0x30] sm:$0xff]  ;;  %v39_v49 = vld [vmem:[%s3036_s0 + $0x38] sm:$0xff] }
   0x6   :  { %2217 = vmatprep.subr.mxu1 %v2552_v0  ;;  %2202 = vmatmul.mubr.msk.f32.vlgmr.msra.gmra.mxu0 %vm53_vm1, %v33_v6 }
   0x7   :  { %2218 = vmatpush3.msra.mxu1 %v2637_v7  ;;  %2235 = vmatprep.subr.mxu0 %v2552_v0 }
   0x8   :  { %2219 = vmatprep.subr.mxu1 %v2552_v0  ;;  %2236 = vmatpush3.msra.mxu0 %v2613_v2 }
   0x9   :  { %2220 = vmatpush3.msra.mxu1 %v2645_v8  ;;  %2237 = vmatprep.subr.mxu0 %v2552_v0 }
   0xa   :  { %2222 = vmatmul.mubr.f32.vlgmr.msra.gmra.mxu1 %v2552_v0  ;;  %2224 = vmatprep.subr.mxu1 %v2552_v0 }
   0xb   :  { %2225 = vmatpush3.msra.mxu1 %v2613_v2  ;;  %2232 = vmatprep.mubr.msk.f32.mxu1 %vm2553_vm0, %v2552_v0 }
   0xc   :  { %2226 = vmatprep.subr.mxu1 %v2552_v0  ;;  %2238 = vmatpush3.msra.mxu0 %v2624_v4 }
   0xd   :  { %2227 = vmatpush3.msra.mxu1 %v2624_v4  ;;  %2239 = vmatprep.subr.mxu0 %v2552_v0 }
   0xe   :  { %2228 = vmatprep.subr.mxu1 %v2552_v0  ;;  %2240 = vmatpush3.msra.mxu0 %v2637_v7 }
   0xf   :  { %2229 = vmatpush3.msra.mxu1 %v2637_v7  ;;  %2241 = vmatprep.subr.mxu0 %v2552_v0 }
  0x10   :  { %2230 = vmatprep.subr.mxu1 %v2552_v0  ;;  %2242 = vmatpush3.msra.mxu0 %v2645_v8 }
  0x11   :  { %2231 = vmatpush3.msra.mxu1 %v2645_v8  ;;  %2257 = vmatprep.subr.mxu0 %v2552_v0 }
  0x12   :  { %2246 = vmatprep.subr.mxu1 %v2552_v0  ;;  %2204 = vmatprep.mubr.msk.f32.mxu0 %vm53_vm1, %v34_v44 }
  0x13   :  { %2205 = vmatmul.mubr.msk.f32.gmra.mxu0 %vm53_vm1, %v35_v45 }
  0x14   :  { %2207 = vmatprep.mubr.msk.f32.mxu0 %vm53_vm1, %v36_v46 }
  0x17   :  { %2208 = vmatmul.mubr.msk.f32.gmra.mxu0 %vm53_vm1, %v37_v47 }
  0x18   :  { %2210 = vmatprep.mubr.msk.f32.mxu0 %vm53_vm1, %v38_v48 }
  0x1b   :  { %2211 = vmatmul.mubr.msk.f32.gmra.mxu0 %vm53_vm1, %v39_v49 }
  0x1c   :  { %2243 = vmatprep.mubr.msk.f32.mxu0 %vm2553_vm0, %v2552_v0 }
  0xc6   :  { %v2203_v9 = vpop.f32.mrf.mxu0 }
  0xc7   :  { %v150_v30 = vadd.f32 %v2203_v9, %v2674_v10 }
  0xc8   :  { %v144_v11 = vpop.f32.mrf.mxu0 }
  0xc9   :  { %v145_v12 = vadd.f32 %v2674_v10, %v144_v11 }
  0xca   :  { %v253_v13 = vpop.f32.mrf.mxu1 }
  0xcb   :  { %v257_v14 = vadd.f32 %v253_v13, %v145_v12 }
  0xcc   :  { %v2223_v15 = vpop.f32.mrf.mxu1 }
  0xcd   :  { %2424 = vtanh.f32 %v257_v14  ;;  %v2049_v17 = vmul.f32 -1.442695, %v257_v14 }
  0xcf   :  { %2426 = vpow2.f32 %v2049_v17 }
  0xd3   :  { %v2206_v54 = vpop.f32.mrf.mxu0 }
  0xd5   :  { %v154_v55 = vpop.f32.mrf.mxu0 }
  0xd6   :  { %v155_v60 = vadd.f32 %v2674_v10, %v154_v55 }
  0xd7   :  { %v2736_v56 = vpop.f32.mrf.mxu0 }
  0xd9   :  { %v2738_v57 = vpop.f32.mrf.mxu0 }
  0xda   :  { %v2425_v16 = vpop.eup %2424 }
  0xdb   :  { %267 = vrot.lane.b32.xlu0 %v2425_v16, %s2554_s25  ;;  %v2740_v58 = vpop.f32.mrf.mxu0 }
  0xdc   :  { %v2427_v18 = vpop.eup %2426 }
  0xdd   :  { %v261_v19 = vadd.f32 1.0, %v2427_v18  ;;  %v2742_v59 = vpop.f32.mrf.mxu0 }
  0xdf   :  { %2428 = vrcp.f32 %v261_v19 }
  0xec   :  { %v2429_v20 = vpop.eup %2428 }
  0xed   :  { %v265_v23 = vmul.f32 0.0, %v2429_v20 }
 0x14d   :  { %v268_v21 = vpop.permute.xlu0 %267 }
 0x14e   :  { %v270_v22 = vmul.f32 %v2429_v20, %v268_v21 }
 0x150   :  { %272 = vrot.lane.b32.xlu0 %v270_v22, %s2555_s3 }
 0x1c2   :  { %v273_v24 = vpop.permute.xlu0 %272 }
 0x1c3   :  { %v275_v25 = vadd.f32 %v273_v24, %v265_v23 }
 0x1c5   :  { %2430 = vtanh.f32 %v275_v25 }
 0x1d2   :  { %v2431_v26 = vpop.eup %2430 }
 0x1d3   :  { %278 = vrot.lane.b32.xlu1 %v2431_v26, %s2554_s25 }
 0x245   :  { %v279_v27 = vpop.permute.xlu1 %278 }
 0x246   :  { %v281_v28 = vmul.f32 %v2429_v20, %v279_v27  ;;  %v160_v20 = vadd.f32 %v2206_v54, %v2674_v10 }
 0x248   :  { %283 = vrot.lane.b32.xlu1 %v281_v28, %s2555_s3 }
 0x2ba   :  { %v284_v29 = vpop.permute.xlu1 %283 }
 0x2bb   :  { %286 = vst.msk [vmem:[#allocation2] sm:$0xff] %vm183_vm2, %v284_v29  ;;  %2233 = vmatmul.mubr.msk.f32.vlgmr.msra.gmra.mxu1 %vm183_vm2, %v284_v29 }
 0x2bc   :  { %2247 = vmatpush3.msra.mxu1 %v2613_v2  ;;  %2254 = vmatprep.mubr.msk.f32.mxu1 %vm2553_vm0, %v2552_v0 }
 0x2bd   :  { %2248 = vmatprep.subr.mxu1 %v2552_v0 }
 0x2be   :  { %2249 = vmatpush3.msra.mxu1 %v2624_v4 }
 0x2bf   :  { %2250 = vmatprep.subr.mxu1 %v2552_v0 }
 0x2c0   :  { %2251 = vmatpush3.msra.mxu1 %v2637_v7 }
 0x2c1   :  { %2252 = vmatprep.subr.mxu1 %v2552_v0 }
 0x2c2   :  { %2253 = vmatpush3.msra.mxu1 %v2645_v8 }
 0x2c3   :  { %2268 = vmatprep.subr.mxu1 %v2552_v0 }
 0x37b   :  { %v355_v31 = vpop.f32.mrf.mxu1 }
 0x37c   :  { %v359_v32 = vadd.f32 %v355_v31, %v150_v30 }
 0x37d   :  { %v2234_v33 = vpop.f32.mrf.mxu1 }
 0x37e   :  { %2432 = vtanh.f32 %v359_v32  ;;  %v2051_v35 = vmul.f32 -1.442695, %v359_v32 }
 0x380   :  { %2434 = vpow2.f32 %v2051_v35 }
 0x38b   :  { %v2433_v34 = vpop.eup %2432 }
 0x38c   :  { %369 = vrot.lane.b32.xlu0 %v2433_v34, %s2554_s25 }
 0x38d   :  { %v2435_v36 = vpop.eup %2434 }
 0x38e   :  { %v363_v37 = vadd.f32 1.0, %v2435_v36 }
 0x390   :  { %2436 = vrcp.f32 %v363_v37 }
 0x39d   :  { %v2437_v38 = vpop.eup %2436 }
 0x39e   :  { %v367_v41 = vmul.f32 %v2437_v38, %v275_v25 }
 0x3fe   :  { %v370_v39 = vpop.permute.xlu0 %369 }
 0x3ff   :  { %v372_v40 = vmul.f32 %v2437_v38, %v370_v39 }
 0x401   :  { %374 = vrot.lane.b32.xlu1 %v372_v40, %s2555_s3 }
 0x473   :  { %v375_v42 = vpop.permute.xlu1 %374 }
 0x474   :  { %v377_v43 = vadd.f32 %v375_v42, %v367_v41 }
 0x476   :  { %2438 = vtanh.f32 %v377_v43 }
 0x483   :  { %v2439_v50 = vpop.eup %2438 }
 0x484   :  { %380 = vrot.lane.b32.xlu0 %v2439_v50, %s2554_s25 }
 0x4f6   :  { %v381_v51 = vpop.permute.xlu0 %380 }
 0x4f7   :  { %v383_v52 = vmul.f32 %v2437_v38, %v381_v51  ;;  %v165_v38 = vadd.f32 %v2674_v10, %v2738_v57 }
 0x4f9   :  { %385 = vrot.lane.b32.xlu1 %v383_v52, %s2555_s3 }
 0x56b   :  { %v386_v53 = vpop.permute.xlu1 %385 }
 0x56c   :  { %388 = vst.msk [vmem:[#allocation2 + $0x8] sm:$0xff] %vm183_vm2, %v386_v53  ;;  %2244 = vmatmul.mubr.msk.f32.vlgmr.msra.gmra.mxu0 %vm183_vm2, %v386_v53 }
 0x56d   :  { %2258 = vmatpush3.msra.mxu0 %v2613_v2  ;;  %2265 = vmatprep.mubr.msk.f32.mxu0 %vm2553_vm0, %v2552_v0 }
 0x56e   :  { %2259 = vmatprep.subr.mxu0 %v2552_v0 }
 0x56f   :  { %2260 = vmatpush3.msra.mxu0 %v2624_v4 }
 0x570   :  { %2261 = vmatprep.subr.mxu0 %v2552_v0 }
 0x571   :  { %2262 = vmatpush3.msra.mxu0 %v2637_v7 }
 0x572   :  { %2263 = vmatprep.subr.mxu0 %v2552_v0 }
 0x573   :  { %2264 = vmatpush3.msra.mxu0 %v2645_v8 }
 0x574   :  { %2279 = vmatprep.subr.mxu0 %v2552_v0 }
 0x62c   :  { %v457_v61 = vpop.f32.mrf.mxu0 }
 0x62d   :  { %v461_v62 = vadd.f32 %v457_v61, %v155_v60 }
 0x62e   :  { %v2245_v63 = vpop.f32.mrf.mxu0 }
 0x62f   :  { %2440 = vtanh.f32 %v461_v62  ;;  %v2053_v3 = vmul.f32 -1.442695, %v461_v62 }
 0x631   :  { %2442 = vpow2.f32 %v2053_v3 }
 0x63c   :  { %v2441_v1 = vpop.eup %2440 }
 0x63d   :  { %471 = vrot.lane.b32.xlu0 %v2441_v1, %s2554_s25 }
 0x63e   :  { %v2443_v5 = vpop.eup %2442 }
 0x63f   :  { %v465_v6 = vadd.f32 1.0, %v2443_v5 }
 0x641   :  { %2444 = vrcp.f32 %v465_v6 }
 0x64e   :  { %v2445_v9 = vpop.eup %2444 }
 0x64f   :  { %v469_v13 = vmul.f32 %v2445_v9, %v377_v43 }
 0x6af   :  { %v472_v11 = vpop.permute.xlu0 %471 }
 0x6b0   :  { %v474_v12 = vmul.f32 %v2445_v9, %v472_v11 }
 0x6b2   :  { %476 = vrot.lane.b32.xlu1 %v474_v12, %s2555_s3 }
 0x724   :  { %v477_v14 = vpop.permute.xlu1 %476 }
 0x725   :  { %v479_v15 = vadd.f32 %v477_v14, %v469_v13 }
 0x727   :  { %2446 = vtanh.f32 %v479_v15 }
 0x734   :  { %v2447_v16 = vpop.eup %2446 }
 0x735   :  { %482 = vrot.lane.b32.xlu0 %v2447_v16, %s2554_s25  ;;  %v1001_v16 = vld [vmem:[#allocation2] sm:$0xff] }
 0x7a7   :  { %v483_v17 = vpop.permute.xlu0 %482 }
 0x7a8   :  { %v485_v18 = vmul.f32 %v2445_v9, %v483_v17  ;;  %v1012_v9 = vld [vmem:[%s3038_s4 + $0x18] sm:$0xff]  ;;  %v1010_v17 = vld [vmem:[%s3038_s4 + $0x8] sm:$0xff] }
 0x7aa   :  { %487 = vrot.lane.b32.xlu1 %v485_v18, %s2555_s3  ;;  %v1009_v18 = vld [vmem:[%s3038_s4] sm:$0xff] }
 0x81c   :  { %v488_v19 = vpop.permute.xlu1 %487 }
 0x81d   :  { %490 = vst.msk [vmem:[#allocation2 + $0x10] sm:$0xff] %vm183_vm2, %v488_v19  ;;  %2255 = vmatmul.mubr.msk.f32.vlgmr.msra.gmra.mxu1 %vm183_vm2, %v488_v19  ;;  %v1002_v19 = vld [vmem:[#allocation2 + $0x8] sm:$0xff] }
 0x81e   :  { %2269 = vmatpush3.msra.mxu1 %v2613_v2  ;;  %2276 = vmatprep.mubr.msk.f32.mxu1 %vm2553_vm0, %v2552_v0 }
 0x81f   :  { %2270 = vmatprep.subr.mxu1 %v2552_v0 }
 0x820   :  { %2271 = vmatpush3.msra.mxu1 %v2624_v4 }
 0x821   :  { %2272 = vmatprep.subr.mxu1 %v2552_v0 }
 0x822   :  { %2273 = vmatpush3.msra.mxu1 %v2637_v7 }
 0x823   :  { %2274 = vmatprep.subr.mxu1 %v2552_v0 }
 0x824   :  { %2275 = vmatpush3.msra.mxu1 %v2645_v8 }
 0x825   :  { %2290 = vmatprep.subr.mxu1 %v2552_v0 }
 0x8dd   :  { %v559_v21 = vpop.f32.mrf.mxu1 }
 0x8de   :  { %v563_v22 = vadd.f32 %v559_v21, %v160_v20  ;;  %v1003_v20 = vld [vmem:[#allocation2 + $0x10] sm:$0xff] }
 0x8df   :  { %v2256_v23 = vpop.f32.mrf.mxu1 }
 0x8e0   :  { %2448 = vtanh.f32 %v563_v22  ;;  %v2055_v25 = vmul.f32 -1.442695, %v563_v22 }
 0x8e2   :  { %2450 = vpow2.f32 %v2055_v25 }
 0x8ed   :  { %v2449_v24 = vpop.eup %2448 }
 0x8ee   :  { %573 = vrot.lane.b32.xlu0 %v2449_v24, %s2554_s25  ;;  %v175_v24 = vadd.f32 %v2674_v10, %v2742_v59 }
 0x8ef   :  { %v2451_v26 = vpop.eup %2450 }
 0x8f0   :  { %v567_v27 = vadd.f32 1.0, %v2451_v26 }
 0x8f2   :  { %2452 = vrcp.f32 %v567_v27 }
 0x8ff   :  { %v2453_v28 = vpop.eup %2452 }
 0x900   :  { %v571_v31 = vmul.f32 %v2453_v28, %v479_v15  ;;  %v1011_v15 = vld [vmem:[%s3038_s4 + $0x10] sm:$0xff] }
 0x960   :  { %v574_v29 = vpop.permute.xlu0 %573 }
 0x961   :  { %v576_v30 = vmul.f32 %v2453_v28, %v574_v29 }
 0x963   :  { %578 = vrot.lane.b32.xlu1 %v576_v30, %s2555_s3 }
 0x9d5   :  { %v579_v32 = vpop.permute.xlu1 %578 }
 0x9d6   :  { %v581_v33 = vadd.f32 %v579_v32, %v571_v31 }
 0x9d8   :  { %2454 = vtanh.f32 %v581_v33 }
 0x9e5   :  { %v2455_v34 = vpop.eup %2454 }
 0x9e6   :  { %584 = vrot.lane.b32.xlu0 %v2455_v34, %s2554_s25 }
 0xa58   :  { %v585_v35 = vpop.permute.xlu0 %584 }
 0xa59   :  { %v587_v36 = vmul.f32 %v2453_v28, %v585_v35 }
 0xa5b   :  { %589 = vrot.lane.b32.xlu1 %v587_v36, %s2555_s3 }
 0xacd   :  { %v590_v37 = vpop.permute.xlu1 %589 }
 0xace   :  { %592 = vst.msk [vmem:[#allocation2 + $0x18] sm:$0xff] %vm183_vm2, %v590_v37  ;;  %2266 = vmatmul.mubr.msk.f32.vlgmr.msra.gmra.mxu0 %vm183_vm2, %v590_v37 }
 0xacf   :  { %2280 = vmatpush3.msra.mxu0 %v2613_v2  ;;  %2287 = vmatprep.mubr.msk.f32.mxu0 %vm2553_vm0, %v2552_v0 }
 0xad0   :  { %2281 = vmatprep.subr.mxu0 %v2552_v0 }
 0xad1   :  { %2282 = vmatpush3.msra.mxu0 %v2624_v4 }
 0xad2   :  { %2283 = vmatprep.subr.mxu0 %v2552_v0 }
 0xad3   :  { %2284 = vmatpush3.msra.mxu0 %v2637_v7 }
 0xad4   :  { %2285 = vmatprep.subr.mxu0 %v2552_v0 }
 0xad5   :  { %2286 = vmatpush3.msra.mxu0 %v2645_v8  ;;  %v1004_v21 = vld [vmem:[#allocation2 + $0x18] sm:$0xff] }
 0xad6   :  { %2301 = vmatprep.subr.mxu0 %v1012_v9 }
 0xb8e   :  { %v661_v39 = vpop.f32.mrf.mxu0 }
 0xb8f   :  { %v665_v40 = vadd.f32 %v661_v39, %v165_v38  ;;  %v2833_v38 = vld [vmem:[%s3039_s5 + $0x18] sm:$0xff]  ;;  %v2839_v39 = vld [vmem:[%s3039_s5 + $0x10] sm:$0xff] }
 0xb90   :  { %v2267_v41 = vpop.f32.mrf.mxu0 }
 0xb91   :  { %2456 = vtanh.f32 %v665_v40  ;;  %v2057_v43 = vmul.f32 -1.442695, %v665_v40  ;;  %v2846_v40 = vld [vmem:[%s3039_s5 + $0x8] sm:$0xff]  ;;  %v2853_v41 = vld [vmem:[%s3039_s5] sm:$0xff] }
 0xb93   :  { %2458 = vpow2.f32 %v2057_v43 }
 0xb9e   :  { %v2457_v42 = vpop.eup %2456 }
 0xb9f   :  { %675 = vrot.lane.b32.xlu0 %v2457_v42, %s2554_s25 }
 0xba0   :  { %v2459_v44 = vpop.eup %2458 }
 0xba1   :  { %v669_v45 = vadd.f32 1.0, %v2459_v44 }
 0xba3   :  { %2460 = vrcp.f32 %v669_v45 }
 0xbb0   :  { %v2461_v46 = vpop.eup %2460 }
 0xbb1   :  { %v673_v49 = vmul.f32 %v2461_v46, %v581_v33 }
 0xc11   :  { %v676_v47 = vpop.permute.xlu0 %675 }
 0xc12   :  { %v678_v48 = vmul.f32 %v2461_v46, %v676_v47 }
 0xc14   :  { %680 = vrot.lane.b32.xlu1 %v678_v48, %s2555_s3 }
 0xc86   :  { %v681_v50 = vpop.permute.xlu1 %680 }
 0xc87   :  { %v683_v51 = vadd.f32 %v681_v50, %v673_v49 }
 0xc89   :  { %2462 = vtanh.f32 %v683_v51 }
 0xc96   :  { %v2463_v52 = vpop.eup %2462 }
 0xc97   :  { %686 = vrot.lane.b32.xlu0 %v2463_v52, %s2554_s25  ;;  %v2890_v52 = vld [vmem:[%s3040_s6] ss:$0 sm:$0xff] }
 0xd09   :  { %v687_v53 = vpop.permute.xlu0 %686 }
 0xd0a   :  { %v689_v54 = vmul.f32 %v2461_v46, %v687_v53  ;;  %v180_v46 = vadd.f32 %v2740_v58, %v2674_v10 }
 0xd0c   :  { %691 = vrot.lane.b32.xlu1 %v689_v54, %s2555_s3 }
 0xd7e   :  { %v692_v55 = vpop.permute.xlu1 %691 }
 0xd7f   :  { %694 = vst.msk [vmem:[#allocation2 + $0x20] sm:$0xff] %vm183_vm2, %v692_v55  ;;  %2277 = vmatmul.mubr.msk.f32.vlgmr.msra.gmra.mxu1 %vm183_vm2, %v692_v55 }
 0xd80   :  { %2291 = vmatpush3.msra.mxu1 %v2613_v2  ;;  %2298 = vmatprep.mubr.msk.f32.mxu1 %vm2553_vm0, %v2552_v0  ;;  %v170_v2 = vadd.f32 %v2736_v56, %v2674_v10 }
 0xd81   :  { %2292 = vmatprep.subr.mxu1 %v2552_v0 }
 0xd82   :  { %2293 = vmatpush3.msra.mxu1 %v2624_v4 }
 0xd83   :  { %2294 = vmatprep.subr.mxu1 %v2552_v0 }
 0xd84   :  { %2295 = vmatpush3.msra.mxu1 %v2637_v7 }
 0xd85   :  { %2296 = vmatprep.subr.mxu1 %v2552_v0 }
 0xd86   :  { %2297 = vmatpush3.msra.mxu1 %v2645_v8  ;;  %v1005_v22 = vld [vmem:[#allocation2 + $0x20] sm:$0xff] }
 0xd87   :  { %2321 = vmatprep.subr.mxu1 %v2552_v0 }
 0xe3f   :  { %v763_v57 = vpop.f32.mrf.mxu1 }
 0xe40   :  { %v767_v60 = vadd.f32 %v763_v57, %v170_v2 }
 0xe41   :  { %v2278_v61 = vpop.f32.mrf.mxu1 }
 0xe42   :  { %2464 = vtanh.f32 %v767_v60  ;;  %v2059_v4 = vmul.f32 -1.442695, %v767_v60 }
 0xe44   :  { %2466 = vpow2.f32 %v2059_v4 }
 0xe4f   :  { %v2465_v62 = vpop.eup %2464 }
 0xe50   :  { %777 = vrot.lane.b32.xlu0 %v2465_v62, %s2554_s25 }
 0xe51   :  { %v2467_v63 = vpop.eup %2466 }
 0xe52   :  { %v771_v7 = vadd.f32 1.0, %v2467_v63 }
 0xe54   :  { %2468 = vrcp.f32 %v771_v7 }
 0xe61   :  { %v2469_v1 = vpop.eup %2468 }
 0xe62   :  { %v775_v5 = vmul.f32 %v2469_v1, %v683_v51 }
 0xec2   :  { %v778_v3 = vpop.permute.xlu0 %777 }
 0xec3   :  { %v780_v8 = vmul.f32 %v2469_v1, %v778_v3 }
 0xec5   :  { %782 = vrot.lane.b32.xlu1 %v780_v8, %s2555_s3 }
 0xf37   :  { %v783_v6 = vpop.permute.xlu1 %782 }
 0xf38   :  { %v785_v56 = vadd.f32 %v783_v6, %v775_v5 }
 0xf3a   :  { %2470 = vtanh.f32 %v785_v56 }
 0xf47   :  { %v2471_v11 = vpop.eup %2470 }
 0xf48   :  { %788 = vrot.lane.b32.xlu0 %v2471_v11, %s2554_s25 }
 0xfba   :  { %v789_v12 = vpop.permute.xlu0 %788 }
 0xfbb   :  { %v791_v13 = vmul.f32 %v2469_v1, %v789_v12 }
 0xfbd   :  { %793 = vrot.lane.b32.xlu1 %v791_v13, %s2555_s3 }
0x102f   :  { %v794_v14 = vpop.permute.xlu1 %793 }
0x1030   :  { %796 = vst.msk [vmem:[#allocation2 + $0x28] sm:$0xff] %vm183_vm2, %v794_v14  ;;  %2288 = vmatmul.mubr.msk.f32.vlgmr.msra.gmra.mxu0 %vm183_vm2, %v794_v14 }
0x1031   :  { %2302 = vmatpush3.msra.mxu0 %v1012_v9  ;;  %2309 = vmatprep.mubr.msk.f32.mxu0 %vm183_vm2, %v1001_v16 }
0x1032   :  { %2303 = vmatprep.subr.mxu0 %v1011_v15 }
0x1033   :  { %2304 = vmatpush3.msra.mxu0 %v1011_v15 }
0x1034   :  { %2305 = vmatprep.subr.mxu0 %v1010_v17 }
0x1035   :  { %2306 = vmatpush3.msra.mxu0 %v1010_v17 }
0x1036   :  { %2307 = vmatprep.subr.mxu0 %v1009_v18 }
0x1037   :  { %2308 = vmatpush3.msra.mxu0 %v1009_v18  ;;  %v1006_v23 = vld [vmem:[#allocation2 + $0x28] sm:$0xff] }
0x1038   :  { %2310 = vmatmul.mubr.msk.f32.vlgmr.msra.gmra.mxu0 %vm183_vm2, %v1002_v19  ;;  %2343 = vmatprep.subr.mxu0 %v2552_v0 }
0x1039   :  { %2312 = vmatprep.mubr.msk.f32.mxu0 %vm183_vm2, %v1003_v20  ;;  %2344 = vmatpush3.msra.mxu0 %v2833_v38 }
0x103a   :  { %2345 = vmatprep.subr.mxu0 %v2552_v0 }
0x103b   :  { %2346 = vmatpush3.msra.mxu0 %v2839_v39 }
0x103c   :  { %2313 = vmatmul.mubr.msk.f32.gmra.mxu0 %vm183_vm2, %v1004_v21  ;;  %2347 = vmatprep.subr.mxu0 %v2552_v0 }
0x103d   :  { %2315 = vmatprep.mubr.msk.f32.mxu0 %vm183_vm2, %v1005_v22  ;;  %2348 = vmatpush3.msra.mxu0 %v2846_v40 }
0x103e   :  { %2349 = vmatprep.subr.mxu0 %v2552_v0 }
0x103f   :  { %2350 = vmatpush3.msra.mxu0 %v2853_v41 }
0x1040   :  { %2316 = vmatmul.mubr.msk.f32.gmra.mxu0 %vm183_vm2, %v1006_v23  ;;  %2365 = vmatprep.subr.mxu0 %v2552_v0 }
0x10f0   :  { %v865_v25 = vpop.f32.mrf.mxu0 }
0x10f1   :  { %v869_v26 = vadd.f32 %v865_v25, %v175_v24 }
0x10f2   :  { %v2289_v27 = vpop.f32.mrf.mxu0 }
0x10f3   :  { %2472 = vtanh.f32 %v869_v26  ;;  %v2061_v29 = vmul.f32 -1.442695, %v869_v26 }
0x10f5   :  { %2474 = vpow2.f32 %v2061_v29 }
0x10f8   :  { %v2885_v47 = vpop.f32.mrf.mxu0 }
0x10f9   :  { %v1120_v22 = vadd.f32 %v2885_v47, %v2890_v52 }
0x10fa   :  { %v1114_v51 = vpop.f32.mrf.mxu0 }
0x10fb   :  { %v1115_v53 = vadd.f32 %v2890_v52, %v1114_v51 }
0x1100   :  { %v2473_v28 = vpop.eup %2472 }
0x1101   :  { %879 = vrot.lane.b32.xlu0 %v2473_v28, %s2554_s25 }
0x1102   :  { %v2475_v30 = vpop.eup %2474 }
0x1103   :  { %v873_v31 = vadd.f32 1.0, %v2475_v30 }
0x1105   :  { %2476 = vrcp.f32 %v873_v31 }
0x1112   :  { %v2477_v32 = vpop.eup %2476 }
0x1113   :  { %v877_v35 = vmul.f32 %v2477_v32, %v785_v56 }
0x1173   :  { %v880_v33 = vpop.permute.xlu0 %879 }
0x1174   :  { %v882_v34 = vmul.f32 %v2477_v32, %v880_v33 }
0x1176   :  { %884 = vrot.lane.b32.xlu1 %v882_v34, %s2555_s3 }
0x11e8   :  { %v885_v36 = vpop.permute.xlu1 %884 }
0x11e9   :  { %v2826_v59 = vadd.f32 %v885_v36, %v877_v35 }
0x11eb   :  { %2478 = vtanh.f32 %v2826_v59 }
0x11f8   :  { %v2479_v37 = vpop.eup %2478 }
0x11f9   :  { %890 = vrot.lane.b32.xlu0 %v2479_v37, %s2554_s25 }
0x126b   :  { %v891_v42 = vpop.permute.xlu0 %890 }
0x126c   :  { %v893_v43 = vmul.f32 %v2477_v32, %v891_v42 }
0x126e   :  { %895 = vrot.lane.b32.xlu1 %v893_v43, %s2555_s3 }
0x12e0   :  { %v896_v44 = vpop.permute.xlu1 %895 }
0x12e1   :  { %898 = vst.msk [vmem:[#allocation2 + $0x30] sm:$0xff] %vm183_vm2, %v896_v44  ;;  %2299 = vmatmul.mubr.msk.f32.vlgmr.msra.gmra.mxu1 %vm183_vm2, %v896_v44 }
0x12e2   :  { %2322 = vmatpush3.msra.mxu1 %v2833_v38  ;;  %2329 = vmatprep.mubr.msk.f32.mxu1 %vm2553_vm0, %v2552_v0 }
0x12e3   :  { %2323 = vmatprep.subr.mxu1 %v2552_v0 }
0x12e4   :  { %2324 = vmatpush3.msra.mxu1 %v2839_v39 }
0x12e5   :  { %2325 = vmatprep.subr.mxu1 %v2552_v0 }
0x12e6   :  { %2326 = vmatpush3.msra.mxu1 %v2846_v40 }
0x12e7   :  { %2327 = vmatprep.subr.mxu1 %v2552_v0 }
0x12e8   :  { %2328 = vmatpush3.msra.mxu1 %v2853_v41  ;;  %v1007_v45 = vld [vmem:[#allocation2 + $0x30] sm:$0xff] }
0x12e9   :  { %2330 = vmatmul.mubr.f32.vlgmr.msra.gmra.mxu1 %v2552_v0  ;;  %2318 = vmatprep.mubr.msk.f32.mxu0 %vm183_vm2, %v1007_v45  ;;  %v2314_v45 = vpop.f32.mrf.mxu0 }
0x12ea   :  { %2332 = vmatprep.subr.mxu1 %v2552_v0  ;;  %2340 = vmatprep.mubr.msk.f32.mxu1 %vm2553_vm0, %v2552_v0 }
0x12eb   :  { %2333 = vmatpush3.msra.mxu1 %v2833_v38 }
0x12ec   :  { %2334 = vmatprep.subr.mxu1 %v2552_v0 }
0x12ed   :  { %2335 = vmatpush3.msra.mxu1 %v2839_v39 }
0x12ee   :  { %2336 = vmatprep.subr.mxu1 %v2552_v0 }
0x12ef   :  { %2337 = vmatpush3.msra.mxu1 %v2846_v40 }
0x12f0   :  { %2338 = vmatprep.subr.mxu1 %v2552_v0 }
0x12f1   :  { %2339 = vmatpush3.msra.mxu1 %v2853_v41 }
0x12f2   :  { %2354 = vmatprep.subr.mxu1 %v2552_v0 }
0x13a1   :  { %v967_v48 = vpop.f32.mrf.mxu1 }
0x13a2   :  { %v971_v49 = vadd.f32 %v967_v48, %v180_v46  ;;  %v1124_v46 = vpop.f32.mrf.mxu0 }
0x13a3   :  { %v2300_v50 = vpop.f32.mrf.mxu1  ;;  %v1125_v51 = vadd.f32 %v2890_v52, %v1124_v46 }
0x13a4   :  { %v2063_v5 = vmul.f32 -1.442695, %v971_v49  ;;  %v2934_v47 = vpop.f32.mrf.mxu0 }
0x13a6   :  { %v2936_v48 = vpop.f32.mrf.mxu0 }
0x13a9   :  { %v1219_v54 = vpop.f32.mrf.mxu1 }
0x13aa   :  { %v1223_v55 = vadd.f32 %v1219_v54, %v1115_v53 }
0x13ab   :  { %v2331_v2 = vpop.f32.mrf.mxu1 }
0x13ac   :  { %2480 = vtanh.f32 %v1223_v55  ;;  %v2073_v10 = vmul.f32 -1.442695, %v1223_v55 }
0x13ae   :  { %2482 = vpow2.f32 %v2073_v10 }
0x13b9   :  { %v2481_v57 = vpop.eup %2480 }
0x13ba   :  { %1233 = vrot.lane.b32.xlu0 %v2481_v57, %s2554_s25 }
0x13bb   :  { %v2483_v58 = vpop.eup %2482 }
0x13bc   :  { %v1227_v60 = vadd.f32 1.0, %v2483_v58 }
0x13be   :  { %2484 = vrcp.f32 %v1227_v60 }
0x13cb   :  { %v2485_v61 = vpop.eup %2484 }
0x13cc   :  { %v1231_v63 = vmul.f32 0.0, %v2485_v61 }
0x142c   :  { %v1234_v62 = vpop.permute.xlu0 %1233 }
0x142d   :  { %v1236_v4 = vmul.f32 %v2485_v61, %v1234_v62 }
0x142f   :  { %1238 = vrot.lane.b32.xlu1 %v1236_v4, %s2555_s3 }
0x14a1   :  { %v1239_v7 = vpop.permute.xlu1 %1238 }
0x14a2   :  { %v1241_v1 = vadd.f32 %v1239_v7, %v1231_v63 }
0x14a4   :  { %2486 = vtanh.f32 %v1241_v1 }
0x14a5   :  { %2488 = vtanh.f32 %v971_v49 }
0x14a6   :  { %2490 = vpow2.f32 %v2063_v5 }
0x14b1   :  { %v2487_v3 = vpop.eup %2486 }
0x14b2   :  { %1244 = vrot.lane.b32.xlu0 %v2487_v3, %s2554_s25  ;;  %v2489_v8 = vpop.eup %2488 }
0x14b3   :  { %v2491_v6 = vpop.eup %2490 }
0x14b4   :  { %v975_v56 = vadd.f32 1.0, %v2491_v6  ;;  %v1130_v6 = vadd.f32 %v2314_v45, %v2890_v52 }
0x14b6   :  { %981 = vrot.lane.b32.xlu0 %v2489_v8, %s2554_s25  ;;  %2492 = vrcp.f32 %v975_v56 }
0x14c3   :  { %v2493_v12 = vpop.eup %2492 }
0x14c4   :  { %v979_v16 = vmul.f32 %v2493_v12, %v2826_v59 }
0x1524   :  { %v1245_v9 = vpop.permute.xlu0 %1244 }
0x1525   :  { %v1247_v11 = vmul.f32 %v2485_v61, %v1245_v9 }
0x1527   :  { %1249 = vrot.lane.b32.xlu1 %v1247_v11, %s2555_s3 }
0x1528   :  { %v982_v13 = vpop.permute.xlu0 %981 }
0x1529   :  { %v984_v14 = vmul.f32 %v2493_v12, %v982_v13 }
0x152b   :  { %986 = vrot.lane.b32.xlu0 %v984_v14, %s2555_s3 }
0x1599   :  { %v1250_v15 = vpop.permute.xlu1 %1249 }
0x159a   :  { %2341 = vmatmul.mubr.msk.f32.vlgmr.msra.gmra.mxu1 %vm183_vm2, %v1250_v15 }
0x159b   :  { %2355 = vmatpush3.msra.mxu1 %v2833_v38  ;;  %2362 = vmatprep.mubr.msk.f32.mxu1 %vm2553_vm0, %v2552_v0 }
0x159c   :  { %2356 = vmatprep.subr.mxu1 %v2552_v0 }
0x159d   :  { %v987_v17 = vpop.permute.xlu0 %986  ;;  %2357 = vmatpush3.msra.mxu1 %v2839_v39 }
0x159e   :  { %v989_v18 = vadd.f32 %v987_v17, %v979_v16  ;;  %2358 = vmatprep.subr.mxu1 %v2552_v0 }
0x159f   :  { %2359 = vmatpush3.msra.mxu1 %v2846_v40 }
0x15a0   :  { %2494 = vtanh.f32 %v989_v18  ;;  %2360 = vmatprep.subr.mxu1 %v2552_v0 }
0x15a1   :  { %2361 = vmatpush3.msra.mxu1 %v2853_v41 }
0x15a2   :  { %2376 = vmatprep.subr.mxu1 %v2552_v0 }
0x15ad   :  { %v2495_v19 = vpop.eup %2494 }
0x15ae   :  { %992 = vrot.lane.b32.xlu0 %v2495_v19, %s2554_s25 }
0x1620   :  { %v993_v20 = vpop.permute.xlu0 %992 }
0x1621   :  { %v995_v21 = vmul.f32 %v2493_v12, %v993_v20 }
0x1623   :  { %997 = vrot.lane.b32.xlu0 %v995_v21, %s2555_s3 }
0x165a   :  { %v1319_v23 = vpop.f32.mrf.mxu1 }
0x165b   :  { %v1323_v24 = vadd.f32 %v1319_v23, %v1120_v22 }
0x165c   :  { %v2342_v25 = vpop.f32.mrf.mxu1 }
0x165d   :  { %2496 = vtanh.f32 %v1323_v24  ;;  %v2075_v29 = vmul.f32 -1.442695, %v1323_v24 }
0x165f   :  { %2498 = vpow2.f32 %v2075_v29 }
0x166a   :  { %v2497_v26 = vpop.eup %2496 }
0x166b   :  { %1333 = vrot.lane.b32.xlu1 %v2497_v26, %s2554_s25  ;;  %v1135_v26 = vadd.f32 %v2890_v52, %v2936_v48  ;;  %v1140_v48 = vadd.f32 %v2934_v47, %v2890_v52 }
0x166c   :  { %v2499_v30 = vpop.eup %2498 }
0x166d   :  { %v1327_v31 = vadd.f32 1.0, %v2499_v30 }
0x166f   :  { %2500 = vrcp.f32 %v1327_v31 }
0x167c   :  { %v2501_v32 = vpop.eup %2500 }
0x167d   :  { %v1331_v35 = vmul.f32 %v2501_v32, %v1241_v1 }
0x1695   :  { %v998_v27 = vpop.permute.xlu0 %997 }
0x1696   :  { %1000 = vst.msk [vmem:[#allocation2 + $0x38] sm:$0xff] %vm183_vm2, %v998_v27 }
0x169d   :  { %v1008_v28 = vld [vmem:[#allocation2 + $0x38] sm:$0xff] }
0x169e   :  { %2319 = vmatmul.mubr.msk.f32.gmra.mxu0 %vm183_vm2, %v1008_v28 }
0x169f   :  { %2351 = vmatprep.mubr.msk.f32.mxu0 %vm2553_vm0, %v2552_v0 }
0x16dd   :  { %v1334_v33 = vpop.permute.xlu1 %1333 }
0x16de   :  { %v1336_v34 = vmul.f32 %v2501_v32, %v1334_v33 }
0x16e0   :  { %1338 = vrot.lane.b32.xlu1 %v1336_v34, %s2555_s3 }
0x1752   :  { %v1339_v36 = vpop.permute.xlu1 %1338 }
0x1753   :  { %v1341_v59 = vadd.f32 %v1339_v36, %v1331_v35 }
0x1755   :  { %2502 = vtanh.f32 %v1341_v59 }
0x175e   :  { %v2938_v49 = vpop.f32.mrf.mxu0 }
0x1760   :  { %v2940_v50 = vpop.f32.mrf.mxu0 }
0x1762   :  { %v2503_v37 = vpop.eup %2502 }
0x1763   :  { %1344 = vrot.lane.b32.xlu1 %v2503_v37, %s2554_s25 }
0x17d5   :  { %v1345_v42 = vpop.permute.xlu1 %1344 }
0x17d6   :  { %v1347_v43 = vmul.f32 %v2501_v32, %v1345_v42 }
0x17d8   :  { %1349 = vrot.lane.b32.xlu1 %v1347_v43, %s2555_s3 }
0x184a   :  { %v1350_v44 = vpop.permute.xlu1 %1349 }
0x184b   :  { %2352 = vmatmul.mubr.msk.f32.vlgmr.msra.gmra.mxu0 %vm183_vm2, %v1350_v44 }
0x184c   :  { %2366 = vmatpush3.msra.mxu0 %v2833_v38  ;;  %2373 = vmatprep.mubr.msk.f32.mxu0 %vm2553_vm0, %v2552_v0 }
0x184d   :  { %2367 = vmatprep.subr.mxu0 %v2552_v0 }
0x184e   :  { %2368 = vmatpush3.msra.mxu0 %v2839_v39 }
0x184f   :  { %2369 = vmatprep.subr.mxu0 %v2552_v0 }
0x1850   :  { %2370 = vmatpush3.msra.mxu0 %v2846_v40 }
0x1851   :  { %2371 = vmatprep.subr.mxu0 %v2552_v0 }
0x1852   :  { %2372 = vmatpush3.msra.mxu0 %v2853_v41 }
0x1853   :  { %2387 = vmatprep.subr.mxu0 %v2552_v0 }
0x190b   :  { %v1419_v53 = vpop.f32.mrf.mxu0 }
0x190c   :  { %v1423_v54 = vadd.f32 %v1419_v53, %v1125_v51 }
0x190d   :  { %v2353_v55 = vpop.f32.mrf.mxu0 }
0x190e   :  { %2504 = vtanh.f32 %v1423_v54  ;;  %v2077_v57 = vmul.f32 -1.442695, %v1423_v54 }
0x1910   :  { %2506 = vpow2.f32 %v2077_v57 }
0x191b   :  { %v2505_v2 = vpop.eup %2504 }
0x191c   :  { %1433 = vrot.lane.b32.xlu0 %v2505_v2, %s2554_s25 }
0x191d   :  { %v2507_v10 = vpop.eup %2506 }
0x191e   :  { %v1427_v58 = vadd.f32 1.0, %v2507_v10 }
0x1920   :  { %2508 = vrcp.f32 %v1427_v58 }
0x192d   :  { %v2509_v60 = vpop.eup %2508 }
0x192e   :  { %v1431_v4 = vmul.f32 %v2509_v60, %v1341_v59 }
0x198e   :  { %v1434_v61 = vpop.permute.xlu0 %1433 }
0x198f   :  { %v1436_v62 = vmul.f32 %v2509_v60, %v1434_v61 }
0x1991   :  { %1438 = vrot.lane.b32.xlu1 %v1436_v62, %s2555_s3 }
0x1a03   :  { %v1439_v63 = vpop.permute.xlu1 %1438 }
0x1a04   :  { %v1441_v7 = vadd.f32 %v1439_v63, %v1431_v4  ;;  %v1145_v63 = vadd.f32 %v2890_v52, %v2940_v50 }
0x1a06   :  { %2510 = vtanh.f32 %v1441_v7 }
0x1a13   :  { %v2511_v1 = vpop.eup %2510 }
0x1a14   :  { %1444 = vrot.lane.b32.xlu0 %v2511_v1, %s2554_s25 }
0x1a86   :  { %v1445_v3 = vpop.permute.xlu0 %1444 }
0x1a87   :  { %v1447_v8 = vmul.f32 %v2509_v60, %v1445_v3 }
0x1a89   :  { %1449 = vrot.lane.b32.xlu1 %v1447_v8, %s2555_s3 }
0x1afb   :  { %v1450_v5 = vpop.permute.xlu1 %1449 }
0x1afc   :  { %2363 = vmatmul.mubr.msk.f32.vlgmr.msra.gmra.mxu1 %vm183_vm2, %v1450_v5 }
0x1afd   :  { %2377 = vmatpush3.msra.mxu1 %v2833_v38  ;;  %2384 = vmatprep.mubr.msk.f32.mxu1 %vm2553_vm0, %v2552_v0 }
0x1afe   :  { %2378 = vmatprep.subr.mxu1 %v2552_v0 }
0x1aff   :  { %2379 = vmatpush3.msra.mxu1 %v2839_v39 }
0x1b00   :  { %2380 = vmatprep.subr.mxu1 %v2552_v0 }
0x1b01   :  { %2381 = vmatpush3.msra.mxu1 %v2846_v40 }
0x1b02   :  { %2382 = vmatprep.subr.mxu1 %v2552_v0 }
0x1b03   :  { %2383 = vmatpush3.msra.mxu1 %v2853_v41 }
0x1b04   :  { %2398 = vmatprep.subr.mxu1 %v2552_v0 }
0x1bbc   :  { %v1519_v56 = vpop.f32.mrf.mxu1 }
0x1bbd   :  { %v1523_v9 = vadd.f32 %v1519_v56, %v1130_v6 }
0x1bbe   :  { %v2364_v11 = vpop.f32.mrf.mxu1 }
0x1bbf   :  { %2512 = vtanh.f32 %v1523_v9  ;;  %v2079_v13 = vmul.f32 -1.442695, %v1523_v9 }
0x1bc1   :  { %2514 = vpow2.f32 %v2079_v13 }
0x1bcc   :  { %v2513_v12 = vpop.eup %2512 }
0x1bcd   :  { %1533 = vrot.lane.b32.xlu0 %v2513_v12, %s2554_s25 }
0x1bce   :  { %v2515_v14 = vpop.eup %2514 }
0x1bcf   :  { %v1527_v15 = vadd.f32 1.0, %v2515_v14 }
0x1bd1   :  { %2516 = vrcp.f32 %v1527_v15 }
0x1bde   :  { %v2517_v16 = vpop.eup %2516 }
0x1bdf   :  { %v1531_v19 = vmul.f32 %v2517_v16, %v1441_v7 }
0x1c3f   :  { %v1534_v17 = vpop.permute.xlu0 %1533 }
0x1c40   :  { %v1536_v18 = vmul.f32 %v2517_v16, %v1534_v17 }
0x1c42   :  { %1538 = vrot.lane.b32.xlu1 %v1536_v18, %s2555_s3 }
0x1cb4   :  { %v1539_v20 = vpop.permute.xlu1 %1538 }
0x1cb5   :  { %v1541_v21 = vadd.f32 %v1539_v20, %v1531_v19  ;;  %v1150_v19 = vadd.f32 %v2938_v49, %v2890_v52  ;;  %v1951_v49 = vld [vmem:[%s3041_s7 + $0x18] sm:$0xff] }
0x1cb7   :  { %2518 = vtanh.f32 %v1541_v21 }
0x1cc4   :  { %v2519_v22 = vpop.eup %2518 }
0x1cc5   :  { %1544 = vrot.lane.b32.xlu0 %v2519_v22, %s2554_s25 }
0x1d37   :  { %v1545_v23 = vpop.permute.xlu0 %1544 }
0x1d38   :  { %v1547_v24 = vmul.f32 %v2517_v16, %v1545_v23 }
0x1d3a   :  { %1549 = vrot.lane.b32.xlu1 %v1547_v24, %s2555_s3 }
0x1dac   :  { %v1550_v25 = vpop.permute.xlu1 %1549 }
0x1dad   :  { %2374 = vmatmul.mubr.msk.f32.vlgmr.msra.gmra.mxu0 %vm183_vm2, %v1550_v25 }
0x1dae   :  { %2388 = vmatpush3.msra.mxu0 %v2833_v38  ;;  %2395 = vmatprep.mubr.msk.f32.mxu0 %vm2553_vm0, %v2552_v0 }
0x1daf   :  { %2389 = vmatprep.subr.mxu0 %v2552_v0 }
0x1db0   :  { %2390 = vmatpush3.msra.mxu0 %v2839_v39 }
0x1db1   :  { %2391 = vmatprep.subr.mxu0 %v2552_v0 }
0x1db2   :  { %2392 = vmatpush3.msra.mxu0 %v2846_v40 }
0x1db3   :  { %2393 = vmatprep.subr.mxu0 %v2552_v0 }
0x1db4   :  { %2394 = vmatpush3.msra.mxu0 %v2853_v41 }
0x1db5   :  { %2409 = vmatprep.subr.mxu0 %v2552_v0 }
0x1e6d   :  { %v1619_v27 = vpop.f32.mrf.mxu0 }
0x1e6e   :  { %v1623_v28 = vadd.f32 %v1619_v27, %v1135_v26 }
0x1e6f   :  { %v2375_v29 = vpop.f32.mrf.mxu0 }
0x1e70   :  { %2520 = vtanh.f32 %v1623_v28  ;;  %v2081_v31 = vmul.f32 -1.442695, %v1623_v28 }
0x1e72   :  { %2522 = vpow2.f32 %v2081_v31 }
0x1e7d   :  { %v2521_v30 = vpop.eup %2520 }
0x1e7e   :  { %1633 = vrot.lane.b32.xlu0 %v2521_v30, %s2554_s25 }
0x1e7f   :  { %v2523_v32 = vpop.eup %2522 }
0x1e80   :  { %v1627_v33 = vadd.f32 1.0, %v2523_v32  ;;  %v1950_v32 = vld [vmem:[%s3041_s7 + $0x10] sm:$0xff] }
0x1e82   :  { %2524 = vrcp.f32 %v1627_v33  ;;  %v1949_v33 = vld [vmem:[%s3041_s7 + $0x8] sm:$0xff] }
0x1e8f   :  { %v2525_v34 = vpop.eup %2524 }
0x1e90   :  { %v1631_v59 = vmul.f32 %v2525_v34, %v1541_v21 }
0x1ef0   :  { %v1634_v35 = vpop.permute.xlu0 %1633 }
0x1ef1   :  { %v1636_v36 = vmul.f32 %v2525_v34, %v1634_v35 }
0x1ef3   :  { %1638 = vrot.lane.b32.xlu1 %v1636_v36, %s2555_s3 }
0x1f65   :  { %v1639_v37 = vpop.permute.xlu1 %1638 }
0x1f66   :  { %v1641_v42 = vadd.f32 %v1639_v37, %v1631_v59 }
0x1f68   :  { %2526 = vtanh.f32 %v1641_v42 }
0x1f75   :  { %v2527_v43 = vpop.eup %2526 }
0x1f76   :  { %1644 = vrot.lane.b32.xlu0 %v2527_v43, %s2554_s25 }
0x1fe8   :  { %v1645_v44 = vpop.permute.xlu0 %1644 }
0x1fe9   :  { %v1647_v45 = vmul.f32 %v2525_v34, %v1645_v44  ;;  %v1948_v34 = vld [vmem:[%s3041_s7] sm:$0xff] }
0x1feb   :  { %1649 = vrot.lane.b32.xlu1 %v1647_v45, %s2555_s3 }
0x205d   :  { %v1650_v46 = vpop.permute.xlu1 %1649 }
0x205e   :  { %2385 = vmatmul.mubr.msk.f32.vlgmr.msra.gmra.mxu1 %vm183_vm2, %v1650_v46 }
0x205f   :  { %2399 = vmatpush3.msra.mxu1 %v2833_v38  ;;  %2406 = vmatprep.mubr.msk.f32.mxu1 %vm2553_vm0, %v2552_v0 }
0x2060   :  { %2400 = vmatprep.subr.mxu1 %v2552_v0 }
0x2061   :  { %2401 = vmatpush3.msra.mxu1 %v2839_v39 }
0x2062   :  { %2402 = vmatprep.subr.mxu1 %v2552_v0 }
0x2063   :  { %2403 = vmatpush3.msra.mxu1 %v2846_v40 }
0x2064   :  { %2404 = vmatprep.subr.mxu1 %v2552_v0 }
0x2065   :  { %2405 = vmatpush3.msra.mxu1 %v2853_v41 }
0x211e   :  { %v1719_v51 = vpop.f32.mrf.mxu1 }
0x211f   :  { %v1723_v38 = vadd.f32 %v1719_v51, %v1140_v48 }
0x2120   :  { %v2386_v53 = vpop.f32.mrf.mxu1 }
0x2121   :  { %2528 = vtanh.f32 %v1723_v38  ;;  %v2083_v55 = vmul.f32 -1.442695, %v1723_v38 }
0x2123   :  { %2530 = vpow2.f32 %v2083_v55 }
0x212e   :  { %v2529_v54 = vpop.eup %2528 }
0x212f   :  { %1733 = vrot.lane.b32.xlu0 %v2529_v54, %s2554_s25 }
0x2130   :  { %v2531_v39 = vpop.eup %2530 }
0x2131   :  { %v1727_v2 = vadd.f32 1.0, %v2531_v39 }
0x2133   :  { %2532 = vrcp.f32 %v1727_v2 }
0x2140   :  { %v2533_v40 = vpop.eup %2532 }
0x2141   :  { %v1731_v41 = vmul.f32 %v2533_v40, %v1641_v42  ;;  %v2088_v42 = vld [vmem:[%s3042_s8] ss:$0 sm:$0xff] }
0x21a1   :  { %v1734_v57 = vpop.permute.xlu0 %1733 }
0x21a2   :  { %v1736_v10 = vmul.f32 %v2533_v40, %v1734_v57 }
0x21a4   :  { %1738 = vrot.lane.b32.xlu1 %v1736_v10, %s2555_s3 }
0x2216   :  { %v1739_v58 = vpop.permute.xlu1 %1738 }
0x2217   :  { %v1741_v47 = vadd.f32 %v1739_v58, %v1731_v41 }
0x2219   :  { %2534 = vtanh.f32 %v1741_v47 }
0x2226   :  { %v2535_v60 = vpop.eup %2534 }
0x2227   :  { %1744 = vrot.lane.b32.xlu0 %v2535_v60, %s2554_s25 }
0x2299   :  { %v1745_v61 = vpop.permute.xlu0 %1744 }
0x229a   :  { %v1747_v62 = vmul.f32 %v2533_v40, %v1745_v61 }
0x229c   :  { %1749 = vrot.lane.b32.xlu1 %v1747_v62, %s2555_s3 }
0x230e   :  { %v1750_v4 = vpop.permute.xlu1 %1749 }
0x230f   :  { %2396 = vmatmul.mubr.msk.f32.vlgmr.msra.gmra.mxu0 %vm183_vm2, %v1750_v4 }
0x2310   :  { %2417 = vmatprep.mubr.msk.f32.mxu0 %vm2553_vm0, %v2552_v0  ;;  %2410 = vmatpush3.msra.mxu0 %v1951_v49 }
0x2311   :  { %2411 = vmatprep.subr.mxu0 %v2552_v0 }
0x2312   :  { %2412 = vmatpush3.msra.mxu0 %v1950_v32 }
0x2313   :  { %2413 = vmatprep.subr.mxu0 %v2552_v0 }
0x2314   :  { %2414 = vmatpush3.msra.mxu0 %v1949_v33 }
0x2315   :  { %2415 = vmatprep.subr.mxu0 %v2552_v0 }
0x2316   :  { %2416 = vmatpush3.msra.mxu0 %v1948_v34 }
0x23cf   :  { %v1819_v7 = vpop.f32.mrf.mxu0 }
0x23d0   :  { %v1823_v1 = vadd.f32 %v1819_v7, %v1145_v63 }
0x23d1   :  { %v2397_v3 = vpop.f32.mrf.mxu0 }
0x23d2   :  { %2536 = vtanh.f32 %v1823_v1  ;;  %v2085_v5 = vmul.f32 -1.442695, %v1823_v1 }
0x23d4   :  { %2538 = vpow2.f32 %v2085_v5 }
0x23df   :  { %v2537_v8 = vpop.eup %2536 }
0x23e0   :  { %1833 = vrot.lane.b32.xlu0 %v2537_v8, %s2554_s25 }
0x23e1   :  { %v2539_v6 = vpop.eup %2538 }
0x23e2   :  { %v1827_v56 = vadd.f32 1.0, %v2539_v6 }
0x23e4   :  { %2540 = vrcp.f32 %v1827_v56 }
0x23f1   :  { %v2541_v9 = vpop.eup %2540 }
0x23f2   :  { %v1831_v13 = vmul.f32 %v2541_v9, %v1741_v47 }
0x2452   :  { %v1834_v11 = vpop.permute.xlu0 %1833 }
0x2453   :  { %v1836_v12 = vmul.f32 %v2541_v9, %v1834_v11 }
0x2455   :  { %1838 = vrot.lane.b32.xlu1 %v1836_v12, %s2555_s3 }
0x24c7   :  { %v1839_v14 = vpop.permute.xlu1 %1838 }
0x24c8   :  { %v1841_v50 = vadd.f32 %v1839_v14, %v1831_v13 }
0x24ca   :  { %2542 = vtanh.f32 %v1841_v50 }
0x24d7   :  { %v2543_v15 = vpop.eup %2542 }
0x24d8   :  { %1844 = vrot.lane.b32.xlu0 %v2543_v15, %s2554_s25 }
0x254a   :  { %v1845_v16 = vpop.permute.xlu0 %1844 }
0x254b   :  { %v1847_v17 = vmul.f32 %v2541_v9, %v1845_v16 }
0x254d   :  { %1849 = vrot.lane.b32.xlu1 %v1847_v17, %s2555_s3 }
0x25bf   :  { %v1850_v18 = vpop.permute.xlu1 %1849 }
0x25c0   :  { %2407 = vmatmul.mubr.msk.f32.vlgmr.msra.gmra.mxu1 %vm183_vm2, %v1850_v18 }
0x2680   :  { %v1919_v20 = vpop.f32.mrf.mxu1 }
0x2681   :  { %v1923_v21 = vadd.f32 %v1919_v20, %v1150_v19 }
0x2682   :  { %v2408_v22 = vpop.f32.mrf.mxu1 }
0x2683   :  { %2544 = vtanh.f32 %v1923_v21  ;;  %v2087_v24 = vmul.f32 -1.442695, %v1923_v21 }
0x2685   :  { %2546 = vpow2.f32 %v2087_v24 }
0x2690   :  { %v2545_v23 = vpop.eup %2544 }
0x2691   :  { %1933 = vrot.lane.b32.xlu0 %v2545_v23, %s2554_s25 }
0x2692   :  { %v2547_v25 = vpop.eup %2546 }
0x2693   :  { %v1927_v26 = vadd.f32 1.0, %v2547_v25 }
0x2695   :  { %2548 = vrcp.f32 %v1927_v26 }
0x26a2   :  { %v2549_v27 = vpop.eup %2548 }
0x26a3   :  { %v1931_v30 = vmul.f32 %v2549_v27, %v1841_v50 }
0x2703   :  { %v1934_v28 = vpop.permute.xlu0 %1933 }
0x2704   :  { %v1936_v29 = vmul.f32 %v2549_v27, %v1934_v28 }
0x2706   :  { %1938 = vrot.lane.b32.xlu1 %v1936_v29, %s2555_s3 }
0x2778   :  { %v1939_v31 = vpop.permute.xlu1 %1938 }
0x2779   :  { %v1941_v52 = vadd.f32 %v1939_v31, %v1931_v30 }
0x277b   :  { %2550 = vtanh.f32 %v1941_v52 }
0x2788   :  { %v2551_v35 = vpop.eup %2550 }
0x2789   :  { %1944 = vrot.lane.b32.xlu0 %v2551_v35, %s2554_s25 }
0x27fb   :  { %v1945_v36 = vpop.permute.xlu0 %1944 }
0x27fc   :  { %v1947_v59 = vmul.f32 %v2549_v27, %v1945_v36 }
0x27fe   :  { %1960 = vrot.lane.b32.xlu1 %v1947_v59, %s2555_s3 }
0x2870   :  { %v1961_v37 = vpop.permute.xlu1 %1960 }
0x2871   :  { %2418 = vmatmul.mubr.msk.f32.vlgmr.msra.gmra.mxu0 %vm183_vm2, %v1961_v37 }
0x2931   :  { %v2030_v43 = vpop.f32.mrf.mxu0 }
0x2932   :  { %v2031_v44 = vadd.f32 %v2088_v42, %v2030_v43 }
0x2933   :  { %v2419_v45 = vpop.f32.mrf.mxu0 }
0x2934   :  { %2035 = vst.msk [vmem:[%s3043_s9] sm:$0xff] %vm2034_vm3, %v2031_v44 }

</bundles_post_ra>
